<compile_context>
chip_gen: v6e
topology: v6e:2x2x1
jax: 0.10.0
libtpu: 0.0.40
codegen_flags: <defaults>
</compile_context>

<pallas_src>
import functools

import jax
import jax.numpy as jnp
from jax.experimental import pallas as pl
from jax.experimental.pallas import tpu as pltpu

THRESHOLD = 0.1   # MHRGCN default threshold for att_coef
EPS = 1e-8        # F.cosine_similarity eps

_PARAM_NAMES = ("W_gc1", "b_gc1", "W_gc2", "b_gc2", "W1_att", "b1_att", "W2_att")


def _vmem_spec():
    # Whole-array operand resident in VMEM (shapes here are tiny).
    return pl.BlockSpec(memory_space=pltpu.MemorySpace.VMEM)


def _round_up(n, m):
    return ((n + m - 1) // m) * m


def _pack_params(params):
    """Pack the 7 small parameter tensors into one (rows, lane) f32 slab.

    Each block starts at a sublane offset that is a multiple of 8, so the
    in-kernel unpack is a static, aligned ref slice.  Returns (slab, offsets)
    where offsets[name] = (row0, rows, cols) are Python ints.
    """
    lane = max(params[n].shape[1] for n in _PARAM_NAMES)
    blocks, offs, row = [], {}, 0
    for name in _PARAM_NAMES:
        a = params[name].astype(jnp.float32)
        r, c = a.shape
        rp = _round_up(r, 8)
        blocks.append(jnp.pad(a, ((0, rp - r), (0, lane - c))))
        offs[name] = (row, r, c)
        row += rp
    return jnp.concatenate(blocks, axis=0), offs


# --------------------------------------------------------------------------
# In-kernel helpers (traced inside the fused kernel body).
# --------------------------------------------------------------------------
def _cosine_sim(x):
    """Row-normalize x (rsqrt on squared norm) and return f32 Gram matrix."""
    sq = jnp.sum(x * x, axis=-1, keepdims=True)
    xn = x * jax.lax.rsqrt(jnp.maximum(sq, EPS * EPS))
    # Contract feature dims of both operands: S = Xn @ Xn^T (f32: the 0.1
    # threshold comparison is sensitive to rounding).
    return jax.lax.dot_general(
        xn, xn,
        dimension_numbers=(((1,), (1,)), ((), ())),
        preferred_element_type=jnp.float32,
    )


def _gcn(a, xw, b):
    """GCNConv aggregation D^{-1/2}(A + I)D^{-1/2} @ XW + b, diag(A) == 0.

    Self-loop added algebraically: deg = rowsum(A) + 1 and
    (A + I) @ Y = A @ Y + Y.  Everything stays f32 (latency-bound size).
    """
    deg = jnp.sum(a, axis=-1, keepdims=True) + 1.0                 # deg >= 1
    dinv = jax.lax.rsqrt(deg)
    y = xw * dinv                                                  # (N, Fout)
    agg = jnp.dot(a, y, preferred_element_type=jnp.float32)
    return (agg + y) * dinv + b


# --------------------------------------------------------------------------
# Fully fused MHRGCN forward kernel.
# --------------------------------------------------------------------------
def _mhrgcn_kernel(x_ref, adj_ref, adj2_ref, p_ref, o_ref, *, offs):
    x = x_ref[...]                                                 # (N, F)
    adj = adj_ref[...]                                             # (N, N)
    adj2 = adj2_ref[...]                                           # (N, N)
    n = adj.shape[0]

    def param(name):
        r0, r, c = offs[name]
        return p_ref[r0:r0 + r, 0:c]                               # static slice

    wg1, bg1 = param("W_gc1"), param("b_gc1")
    wg2, bg2 = param("W_gc2"), param("b_gc2")
    w1a, b1a, w2a = param("W1_att"), param("b1_att"), param("W2_att")

    # Off-diagonal mask built ONCE; with the algebraic +1 self-loop in _gcn it
    # reproduces GCNConv's fill_diag(adj, 1) exactly even if the input
    # adjacency carries self-loops.
    ri = jax.lax.broadcasted_iota(jnp.int32, (n, n), 0)
    ci = jax.lax.broadcasted_iota(jnp.int32, (n, n), 1)
    offdiag = ri != ci

    # ---- round-1 att_coef: one shared cosine-sim matrix for both branches ----
    s = _cosine_sim(x)
    a1 = jnp.where((adj > 0.0) & (s >= THRESHOLD) & offdiag, s, 0.0)
    a2 = jnp.where((adj2 > 0.0) & (s >= THRESHOLD) & offdiag, s, 0.0)

    # ---- layer 1: shared X @ W_gc1, branch-specific aggregation + ReLU -------
    xw = jnp.dot(x, wg1, preferred_element_type=jnp.float32)
    x1 = jnp.maximum(_gcn(a1, xw, bg1), 0.0)
    x2 = jnp.maximum(_gcn(a2, xw, bg1), 0.0)
    # TODO(synk): F.dropout omitted (inference / eval path, identity).

    # ---- round-2 att_coef: ONE stacked Gram matrix for both branches ---------
    xs = jnp.concatenate([x1, x2], axis=0)                         # (2N, nhid)
    g = _cosine_sim(xs)                                            # (2N, 2N)
    s1 = g[:n, :n]
    s2 = g[n:, n:]
    a1 = jnp.where((a1 > 0.0) & (s1 >= THRESHOLD), s1, 0.0)
    a2 = jnp.where((a2 > 0.0) & (s2 >= THRESHOLD), s2, 0.0)

    # ---- layer 2: ONE stacked projection, branch-specific aggregation --------
    xw2 = jnp.dot(xs, wg2, preferred_element_type=jnp.float32)     # (2N, C)
    x1 = _gcn(a1, xw2[:n, :], bg2)
    x2 = _gcn(a2, xw2[n:, :], bg2)

    # ---- attention over the two branches (batched score) + log_softmax -------
    xo = jnp.concatenate([x1, x2], axis=0)                         # (2N, C)
    h = jnp.tanh(jnp.dot(xo, w1a, preferred_element_type=jnp.float32) + b1a)
    sc = jnp.sum(h * w2a, axis=-1, keepdims=True)                  # (2N, 1)
    sc1, sc2 = sc[:n, :], sc[n:, :]

    m = jnp.maximum(sc1, sc2)
    e1 = jnp.exp(sc1 - m)
    e2 = jnp.exp(sc2 - m)
    inv = pl.reciprocal(e1 + e2, approx=True)                      # EUP slot
    z = (e1 * inv) * x1 + (e2 * inv) * x2                          # (N, C)

    zmax = jnp.max(z, axis=-1, keepdims=True)
    zs = z - zmax
    lse = jnp.log(jnp.sum(jnp.exp(zs), axis=-1, keepdims=True))
    o_ref[...] = zs - lse


# --------------------------------------------------------------------------
# Wrapper: single pallas_call for the full forward (eval mode).
# --------------------------------------------------------------------------
def mhrgcn_forward(x, adj, adj2, params):
    # TODO(synk): whole-graph VMEM residency is valid for toy/medium N
    # (dense f32 adjacency = 4*N^2 bytes).  For large graphs: raise
    # vmem_limit_bytes (v6e default scoped VMEM is 32 MiB of 128 MiB physical),
    # or switch to a tiled grid (row tiles "parallel", reduction axis last +
    # "arbitrary", VMEM accumulator with pl.when init/finalize); re-derive
    # tile sizes for v7x's 64 MiB VMEM (halve the adjacency row-slab or go
    # bf16 there) and shard the two branches across v7x's two TensorCores via
    # a leading size-2 "parallel" grid axis once N >= ~512.
    n = x.shape[0]
    nclass = params["W_gc2"].shape[1]
    packed, offs = _pack_params(params)
    kernel = functools.partial(_mhrgcn_kernel, offs=offs)
    return pl.pallas_call(
        kernel,
        out_shape=jax.ShapeDtypeStruct((n, nclass), jnp.float32),
        in_specs=[_vmem_spec()] * 4,
        out_specs=_vmem_spec(),
    )(x, adj, adj2, packed)


if __name__ == "__main__":
    N, nfeat, nhid, nclass = 64, 32, 32, 8

    key = jax.random.PRNGKey(0)
    ks = jax.random.split(key, 8)

    x = jax.random.normal(ks[0], (N, nfeat), dtype=jnp.float32)

    def make_adj(k):
        r = jax.random.uniform(k, (N, N))
        a = (r < 0.2).astype(jnp.float32)
        a = jnp.maximum(a, a.T)                              # symmetric
        a = a * (1.0 - jnp.eye(N, dtype=jnp.float32))        # no self-loops
        return a

    adj = make_adj(ks[1])
    adj2 = make_adj(ks[2])

    # Deterministic synthetic parameters (glorot-ish scaling).
    params = {
        "W_gc1": jax.random.normal(ks[3], (nfeat, nhid), jnp.float32)
        / jnp.sqrt(jnp.float32(nfeat)),
        "b_gc1": jnp.zeros((1, nhid), jnp.float32),
        "W_gc2": jax.random.normal(ks[4], (nhid, nclass), jnp.float32)
        / jnp.sqrt(jnp.float32(nhid)),
        "b_gc2": jnp.zeros((1, nclass), jnp.float32),
        "W1_att": jax.random.normal(ks[5], (nclass, nclass), jnp.float32)
        / jnp.sqrt(jnp.float32(nclass)),
        "b1_att": 0.1 * jax.random.normal(ks[6], (1, nclass), jnp.float32),
        "W2_att": jax.random.normal(ks[7], (1, nclass), jnp.float32)
        / jnp.sqrt(jnp.float32(nclass)),
    }

    out = jax.jit(mhrgcn_forward)(x, adj, adj2, params)
    jax.block_until_ready(out)
    assert out.shape == (N, nclass)
    assert bool(jnp.all(jnp.isfinite(out)))
    print("KERNEL_OK")
</pallas_src>

<mosaic_0001>
module attributes {stable_mosaic.version = 11 : i64} {
  func.func @_mhrgcn_kernel(%arg0: memref<64x32xf32, #tpu.memory_space<vmem>>, %arg1: memref<64x64xf32, #tpu.memory_space<vmem>>, %arg2: memref<64x64xf32, #tpu.memory_space<vmem>>, %arg3: memref<104x32xf32, #tpu.memory_space<vmem>>, %arg4: memref<64x8xf32, #tpu.memory_space<vmem>>) attributes {dimension_semantics = [], scalar_prefetch = 0 : i64, scratch_operands = 0 : i64, tpu.core_type = #tpu.core_type<tc>} {
    %c0 = arith.constant 0 : index
    %c0_0 = arith.constant 0 : index
    %0 = vector.load %arg0[%c0, %c0_0] : memref<64x32xf32, #tpu.memory_space<vmem>>, vector<64x32xf32>
    %c0_1 = arith.constant 0 : index
    %c0_2 = arith.constant 0 : index
    %1 = vector.load %arg1[%c0_1, %c0_2] : memref<64x64xf32, #tpu.memory_space<vmem>>, vector<64x64xf32>
    %c0_3 = arith.constant 0 : index
    %c0_4 = arith.constant 0 : index
    %2 = vector.load %arg2[%c0_3, %c0_4] : memref<64x64xf32, #tpu.memory_space<vmem>>, vector<64x64xf32>
    %c0_5 = arith.constant 0 : index
    %c0_6 = arith.constant 0 : index
    %3 = vector.load %arg3[%c0_5, %c0_6] : memref<104x32xf32, #tpu.memory_space<vmem>>, vector<32x32xf32>
    %c32 = arith.constant 32 : index
    %c0_7 = arith.constant 0 : index
    %4 = vector.load %arg3[%c32, %c0_7] : memref<104x32xf32, #tpu.memory_space<vmem>>, vector<1x32xf32>
    %c40 = arith.constant 40 : index
    %c0_8 = arith.constant 0 : index
    %5 = vector.load %arg3[%c40, %c0_8] : memref<104x32xf32, #tpu.memory_space<vmem>>, vector<32x8xf32>
    %c72 = arith.constant 72 : index
    %c0_9 = arith.constant 0 : index
    %6 = vector.load %arg3[%c72, %c0_9] : memref<104x32xf32, #tpu.memory_space<vmem>>, vector<1x8xf32>
    %c80 = arith.constant 80 : index
    %c0_10 = arith.constant 0 : index
    %7 = vector.load %arg3[%c80, %c0_10] : memref<104x32xf32, #tpu.memory_space<vmem>>, vector<8x8xf32>
    %c88 = arith.constant 88 : index
    %c0_11 = arith.constant 0 : index
    %8 = vector.load %arg3[%c88, %c0_11] : memref<104x32xf32, #tpu.memory_space<vmem>>, vector<1x8xf32>
    %c96 = arith.constant 96 : index
    %c0_12 = arith.constant 0 : index
    %9 = vector.load %arg3[%c96, %c0_12] : memref<104x32xf32, #tpu.memory_space<vmem>>, vector<1x8xf32>
    %10 = tpu.iota {dimensions = array<i32: 0>} : vector<64x64xi32>
    %11 = tpu.iota {dimensions = array<i32: 1>} : vector<64x64xi32>
    %12 = arith.cmpi ne, %10, %11 : vector<64x64xi32>
    %13 = arith.mulf %0, %0 : vector<64x32xf32>
    %cst = arith.constant dense<0.000000e+00> : vector<64xf32>
    %14 = vector.multi_reduction <add>, %13, %cst [1] : vector<64x32xf32> to vector<64xf32>
    %15 = vector.shape_cast %14 : vector<64xf32> to vector<64x1xf32>
    %cst_13 = arith.constant 1.000000e-16 : f32
    %16 = vector.broadcast %cst_13 : f32 to vector<64x1xf32>
    %17 = arith.maximumf %15, %16 : vector<64x1xf32>
    %18 = math.rsqrt %17 : vector<64x1xf32>
    %19 = vector.broadcast %18 : vector<64x1xf32> to vector<64x32xf32>
    %20 = arith.mulf %0, %19 : vector<64x32xf32>
    %cst_14 = arith.constant dense<0.000000e+00> : vector<64x64xf32>
    %21 = tpu.matmul %20, %20, %cst_14 {dimension_numbers = #tpu.dot_dimension_numbers<[1], [1], [0], [0], [0, 0, 1, 0], [], []>} : vector<64x32xf32>, vector<64x32xf32>, vector<64x64xf32> -> vector<64x64xf32>
    %cst_15 = arith.constant 0.000000e+00 : f32
    %22 = vector.broadcast %cst_15 : f32 to vector<64x64xf32>
    %23 = arith.cmpf ogt, %1, %22 : vector<64x64xf32>
    %cst_16 = arith.constant 1.000000e-01 : f32
    %24 = vector.broadcast %cst_16 : f32 to vector<64x64xf32>
    %25 = arith.cmpf oge, %21, %24 : vector<64x64xf32>
    %26 = arith.andi %23, %25 : vector<64x64xi1>
    %27 = arith.andi %26, %12 : vector<64x64xi1>
    %cst_17 = arith.constant 0.000000e+00 : f32
    %28 = vector.broadcast %cst_17 : f32 to vector<64x64xf32>
    %29 = arith.select %27, %21, %28 : vector<64x64xi1>, vector<64x64xf32>
    %cst_18 = arith.constant 0.000000e+00 : f32
    %30 = vector.broadcast %cst_18 : f32 to vector<64x64xf32>
    %31 = arith.cmpf ogt, %2, %30 : vector<64x64xf32>
    %cst_19 = arith.constant 1.000000e-01 : f32
    %32 = vector.broadcast %cst_19 : f32 to vector<64x64xf32>
    %33 = arith.cmpf oge, %21, %32 : vector<64x64xf32>
    %34 = arith.andi %31, %33 : vector<64x64xi1>
    %35 = arith.andi %34, %12 : vector<64x64xi1>
    %cst_20 = arith.constant 0.000000e+00 : f32
    %36 = vector.broadcast %cst_20 : f32 to vector<64x64xf32>
    %37 = arith.select %35, %21, %36 : vector<64x64xi1>, vector<64x64xf32>
    %cst_21 = arith.constant dense<0.000000e+00> : vector<64x32xf32>
    %38 = tpu.matmul %0, %3, %cst_21 {dimension_numbers = #tpu.dot_dimension_numbers<[1], [0], [0], [1], [0, 0, 1, 1], [], []>} : vector<64x32xf32>, vector<32x32xf32>, vector<64x32xf32> -> vector<64x32xf32>
    %cst_22 = arith.constant dense<0.000000e+00> : vector<64xf32>
    %39 = vector.multi_reduction <add>, %29, %cst_22 [1] : vector<64x64xf32> to vector<64xf32>
    %40 = vector.shape_cast %39 : vector<64xf32> to vector<64x1xf32>
    %cst_23 = arith.constant 1.000000e+00 : f32
    %41 = vector.broadcast %cst_23 : f32 to vector<64x1xf32>
    %42 = arith.addf %40, %41 : vector<64x1xf32>
    %43 = math.rsqrt %42 : vector<64x1xf32>
    %44 = vector.broadcast %43 : vector<64x1xf32> to vector<64x32xf32>
    %45 = arith.mulf %38, %44 : vector<64x32xf32>
    %cst_24 = arith.constant dense<0.000000e+00> : vector<64x32xf32>
    %46 = tpu.matmul %29, %45, %cst_24 {dimension_numbers = #tpu.dot_dimension_numbers<[1], [0], [0], [1], [0, 0, 1, 1], [], []>} : vector<64x64xf32>, vector<64x32xf32>, vector<64x32xf32> -> vector<64x32xf32>
    %47 = arith.addf %46, %45 : vector<64x32xf32>
    %48 = vector.broadcast %43 : vector<64x1xf32> to vector<64x32xf32>
    %49 = arith.mulf %47, %48 : vector<64x32xf32>
    %50 = vector.broadcast %4 : vector<1x32xf32> to vector<64x32xf32>
    %51 = arith.addf %49, %50 : vector<64x32xf32>
    %cst_25 = arith.constant 0.000000e+00 : f32
    %52 = vector.broadcast %cst_25 : f32 to vector<64x32xf32>
    %53 = arith.maximumf %51, %52 : vector<64x32xf32>
    %cst_26 = arith.constant dense<0.000000e+00> : vector<64xf32>
    %54 = vector.multi_reduction <add>, %37, %cst_26 [1] : vector<64x64xf32> to vector<64xf32>
    %55 = vector.shape_cast %54 : vector<64xf32> to vector<64x1xf32>
    %cst_27 = arith.constant 1.000000e+00 : f32
    %56 = vector.broadcast %cst_27 : f32 to vector<64x1xf32>
    %57 = arith.addf %55, %56 : vector<64x1xf32>
    %58 = math.rsqrt %57 : vector<64x1xf32>
    %59 = vector.broadcast %58 : vector<64x1xf32> to vector<64x32xf32>
    %60 = arith.mulf %38, %59 : vector<64x32xf32>
    %cst_28 = arith.constant dense<0.000000e+00> : vector<64x32xf32>
    %61 = tpu.matmul %37, %60, %cst_28 {dimension_numbers = #tpu.dot_dimension_numbers<[1], [0], [0], [1], [0, 0, 1, 1], [], []>} : vector<64x64xf32>, vector<64x32xf32>, vector<64x32xf32> -> vector<64x32xf32>
    %62 = arith.addf %61, %60 : vector<64x32xf32>
    %63 = vector.broadcast %58 : vector<64x1xf32> to vector<64x32xf32>
    %64 = arith.mulf %62, %63 : vector<64x32xf32>
    %65 = vector.broadcast %4 : vector<1x32xf32> to vector<64x32xf32>
    %66 = arith.addf %64, %65 : vector<64x32xf32>
    %cst_29 = arith.constant 0.000000e+00 : f32
    %67 = vector.broadcast %cst_29 : f32 to vector<64x32xf32>
    %68 = arith.maximumf %66, %67 : vector<64x32xf32>
    %69 = tpu.concatenate %53, %68 in 0 : vector<64x32xf32>, vector<64x32xf32> -> vector<128x32xf32>
    %70 = arith.mulf %69, %69 : vector<128x32xf32>
    %cst_30 = arith.constant dense<0.000000e+00> : vector<128xf32>
    %71 = vector.multi_reduction <add>, %70, %cst_30 [1] : vector<128x32xf32> to vector<128xf32>
    %72 = vector.shape_cast %71 : vector<128xf32> to vector<128x1xf32>
    %cst_31 = arith.constant 1.000000e-16 : f32
    %73 = vector.broadcast %cst_31 : f32 to vector<128x1xf32>
    %74 = arith.maximumf %72, %73 : vector<128x1xf32>
    %75 = math.rsqrt %74 : vector<128x1xf32>
    %76 = vector.broadcast %75 : vector<128x1xf32> to vector<128x32xf32>
    %77 = arith.mulf %69, %76 : vector<128x32xf32>
    %cst_32 = arith.constant dense<0.000000e+00> : vector<128x128xf32>
    %78 = tpu.matmul %77, %77, %cst_32 {dimension_numbers = #tpu.dot_dimension_numbers<[1], [1], [0], [0], [0, 0, 1, 0], [], []>} : vector<128x32xf32>, vector<128x32xf32>, vector<128x128xf32> -> vector<128x128xf32>
    %79 = vector.extract_strided_slice %78 {offsets = [0, 0], sizes = [64, 64], strides = [1, 1]} : vector<128x128xf32> to vector<64x64xf32>
    %80 = vector.extract_strided_slice %78 {offsets = [64, 64], sizes = [64, 64], strides = [1, 1]} : vector<128x128xf32> to vector<64x64xf32>
    %cst_33 = arith.constant 0.000000e+00 : f32
    %81 = vector.broadcast %cst_33 : f32 to vector<64x64xf32>
    %82 = arith.cmpf ogt, %29, %81 : vector<64x64xf32>
    %cst_34 = arith.constant 1.000000e-01 : f32
    %83 = vector.broadcast %cst_34 : f32 to vector<64x64xf32>
    %84 = arith.cmpf oge, %79, %83 : vector<64x64xf32>
    %85 = arith.andi %82, %84 : vector<64x64xi1>
    %cst_35 = arith.constant 0.000000e+00 : f32
    %86 = vector.broadcast %cst_35 : f32 to vector<64x64xf32>
    %87 = arith.select %85, %79, %86 : vector<64x64xi1>, vector<64x64xf32>
    %cst_36 = arith.constant 0.000000e+00 : f32
    %88 = vector.broadcast %cst_36 : f32 to vector<64x64xf32>
    %89 = arith.cmpf ogt, %37, %88 : vector<64x64xf32>
    %cst_37 = arith.constant 1.000000e-01 : f32
    %90 = vector.broadcast %cst_37 : f32 to vector<64x64xf32>
    %91 = arith.cmpf oge, %80, %90 : vector<64x64xf32>
    %92 = arith.andi %89, %91 : vector<64x64xi1>
    %cst_38 = arith.constant 0.000000e+00 : f32
    %93 = vector.broadcast %cst_38 : f32 to vector<64x64xf32>
    %94 = arith.select %92, %80, %93 : vector<64x64xi1>, vector<64x64xf32>
    %cst_39 = arith.constant dense<0.000000e+00> : vector<128x8xf32>
    %95 = tpu.matmul %69, %5, %cst_39 {dimension_numbers = #tpu.dot_dimension_numbers<[1], [0], [0], [1], [0, 0, 1, 1], [], []>} : vector<128x32xf32>, vector<32x8xf32>, vector<128x8xf32> -> vector<128x8xf32>
    %96 = vector.extract_strided_slice %95 {offsets = [0, 0], sizes = [64, 8], strides = [1, 1]} : vector<128x8xf32> to vector<64x8xf32>
    %cst_40 = arith.constant dense<0.000000e+00> : vector<64xf32>
    %97 = vector.multi_reduction <add>, %87, %cst_40 [1] : vector<64x64xf32> to vector<64xf32>
    %98 = vector.shape_cast %97 : vector<64xf32> to vector<64x1xf32>
    %cst_41 = arith.constant 1.000000e+00 : f32
    %99 = vector.broadcast %cst_41 : f32 to vector<64x1xf32>
    %100 = arith.addf %98, %99 : vector<64x1xf32>
    %101 = math.rsqrt %100 : vector<64x1xf32>
    %102 = vector.broadcast %101 : vector<64x1xf32> to vector<64x8xf32>
    %103 = arith.mulf %96, %102 : vector<64x8xf32>
    %cst_42 = arith.constant dense<0.000000e+00> : vector<64x8xf32>
    %104 = tpu.matmul %87, %103, %cst_42 {dimension_numbers = #tpu.dot_dimension_numbers<[1], [0], [0], [1], [0, 0, 1, 1], [], []>} : vector<64x64xf32>, vector<64x8xf32>, vector<64x8xf32> -> vector<64x8xf32>
    %105 = arith.addf %104, %103 : vector<64x8xf32>
    %106 = vector.broadcast %101 : vector<64x1xf32> to vector<64x8xf32>
    %107 = arith.mulf %105, %106 : vector<64x8xf32>
    %108 = vector.broadcast %6 : vector<1x8xf32> to vector<64x8xf32>
    %109 = arith.addf %107, %108 : vector<64x8xf32>
    %110 = vector.extract_strided_slice %95 {offsets = [64, 0], sizes = [64, 8], strides = [1, 1]} : vector<128x8xf32> to vector<64x8xf32>
    %cst_43 = arith.constant dense<0.000000e+00> : vector<64xf32>
    %111 = vector.multi_reduction <add>, %94, %cst_43 [1] : vector<64x64xf32> to vector<64xf32>
    %112 = vector.shape_cast %111 : vector<64xf32> to vector<64x1xf32>
    %cst_44 = arith.constant 1.000000e+00 : f32
    %113 = vector.broadcast %cst_44 : f32 to vector<64x1xf32>
    %114 = arith.addf %112, %113 : vector<64x1xf32>
    %115 = math.rsqrt %114 : vector<64x1xf32>
    %116 = vector.broadcast %115 : vector<64x1xf32> to vector<64x8xf32>
    %117 = arith.mulf %110, %116 : vector<64x8xf32>
    %cst_45 = arith.constant dense<0.000000e+00> : vector<64x8xf32>
    %118 = tpu.matmul %94, %117, %cst_45 {dimension_numbers = #tpu.dot_dimension_numbers<[1], [0], [0], [1], [0, 0, 1, 1], [], []>} : vector<64x64xf32>, vector<64x8xf32>, vector<64x8xf32> -> vector<64x8xf32>
    %119 = arith.addf %118, %117 : vector<64x8xf32>
    %120 = vector.broadcast %115 : vector<64x1xf32> to vector<64x8xf32>
    %121 = arith.mulf %119, %120 : vector<64x8xf32>
    %122 = vector.broadcast %6 : vector<1x8xf32> to vector<64x8xf32>
    %123 = arith.addf %121, %122 : vector<64x8xf32>
    %124 = tpu.concatenate %109, %123 in 0 : vector<64x8xf32>, vector<64x8xf32> -> vector<128x8xf32>
    %cst_46 = arith.constant dense<0.000000e+00> : vector<128x8xf32>
    %125 = tpu.matmul %124, %7, %cst_46 {dimension_numbers = #tpu.dot_dimension_numbers<[1], [0], [0], [1], [0, 0, 1, 1], [], []>} : vector<128x8xf32>, vector<8x8xf32>, vector<128x8xf32> -> vector<128x8xf32>
    %126 = vector.broadcast %8 : vector<1x8xf32> to vector<128x8xf32>
    %127 = arith.addf %125, %126 : vector<128x8xf32>
    %128 = math.tanh %127 : vector<128x8xf32>
    %129 = vector.broadcast %9 : vector<1x8xf32> to vector<128x8xf32>
    %130 = arith.mulf %128, %129 : vector<128x8xf32>
    %cst_47 = arith.constant dense<0.000000e+00> : vector<128xf32>
    %131 = vector.multi_reduction <add>, %130, %cst_47 [1] : vector<128x8xf32> to vector<128xf32>
    %132 = vector.shape_cast %131 : vector<128xf32> to vector<128x1xf32>
    %133 = vector.extract_strided_slice %132 {offsets = [0, 0], sizes = [64, 1], strides = [1, 1]} : vector<128x1xf32> to vector<64x1xf32>
    %134 = vector.extract_strided_slice %132 {offsets = [64, 0], sizes = [64, 1], strides = [1, 1]} : vector<128x1xf32> to vector<64x1xf32>
    %135 = arith.maximumf %133, %134 : vector<64x1xf32>
    %136 = arith.subf %133, %135 : vector<64x1xf32>
    %137 = math.exp %136 : vector<64x1xf32>
    %138 = arith.subf %134, %135 : vector<64x1xf32>
    %139 = math.exp %138 : vector<64x1xf32>
    %140 = arith.addf %137, %139 : vector<64x1xf32>
    %141 = tpu.reciprocal %140 {approx = true} : vector<64x1xf32> -> vector<64x1xf32>
    %142 = arith.mulf %137, %141 : vector<64x1xf32>
    %143 = vector.broadcast %142 : vector<64x1xf32> to vector<64x8xf32>
    %144 = arith.mulf %143, %109 : vector<64x8xf32>
    %145 = arith.mulf %139, %141 : vector<64x1xf32>
    %146 = vector.broadcast %145 : vector<64x1xf32> to vector<64x8xf32>
    %147 = arith.mulf %146, %123 : vector<64x8xf32>
    %148 = arith.addf %144, %147 : vector<64x8xf32>
    %cst_48 = arith.constant dense<0xFF800000> : vector<64xf32>
    %149 = vector.multi_reduction <maximumf>, %148, %cst_48 [1] : vector<64x8xf32> to vector<64xf32>
    %150 = vector.shape_cast %149 : vector<64xf32> to vector<64x1xf32>
    %151 = vector.broadcast %150 : vector<64x1xf32> to vector<64x8xf32>
    %152 = arith.subf %148, %151 : vector<64x8xf32>
    %153 = math.exp %152 : vector<64x8xf32>
    %cst_49 = arith.constant dense<0.000000e+00> : vector<64xf32>
    %154 = vector.multi_reduction <add>, %153, %cst_49 [1] : vector<64x8xf32> to vector<64xf32>
    %155 = vector.shape_cast %154 : vector<64xf32> to vector<64x1xf32>
    %156 = math.log %155 : vector<64x1xf32>
    %157 = vector.broadcast %156 : vector<64x1xf32> to vector<64x8xf32>
    %158 = arith.subf %152, %157 : vector<64x8xf32>
    %c0_50 = arith.constant 0 : index
    %c0_51 = arith.constant 0 : index
    %159 = vector.load %arg4[%c0_50, %c0_51] : memref<64x8xf32, #tpu.memory_space<vmem>>, vector<64x8xf32>
    tpu.vector_store %arg4[%c0_50, %c0_51], %158 {strides = array<i32>} : memref<64x8xf32, #tpu.memory_space<vmem>>, vector<64x8xf32>,
    return
  }
}

</mosaic_0001>

<bundles_post_ra>
// kernel: mhrgcn_forward.1
= control target key start
LH: loop header
LB: loop body
LE: loop exit
PB: predicated region body
PF: predicated region fallthrough
CT: control target
= control target key end

     0   :  { %vm4646_vm0 = vcmask 261120   ;;  %v54_v62 = vlaneseq  ;;  %vm4652_vm10 = vcmask 523264   ;;  %s3179_s25 = smov 64   ;;  %s4641_s0 = inlined_call_operand.vmem [shape: f32[64,32], index: 0, kind: input, shape index: {}]   ;;  %s4642_s3 = inlined_call_operand.vmem [shape: f32[104,32], index: 3, kind: input, shape index: {}]   ;;  %s4643_s1 = inlined_call_operand.vmem [shape: f32[64,64], index: 1, kind: input, shape index: {}]   ;;  %s4644_s2 = inlined_call_operand.vmem [shape: f32[64,64], index: 2, kind: input, shape index: {}]   ;;  %s4645_s4 = inlined_call_operand.vmem [shape: f32[64,8], index: 4, kind: output, shape index: {}]  }
   0x1   :  { %v3208_v0 = vld [vmem:[%s4641_s0 + $0x38] sm:$0xff]  ;;  %v3213_v1 = vld [vmem:[%s4641_s0 + $0x30] sm:$0xff]  ;;  %v3218_v2 = vld [vmem:[%s4641_s0 + $0x28] sm:$0xff] }
   0x2   :  { %v80_v3 = vmul.f32 %v3208_v0, %v3208_v0  ;;  %v79_v4 = vmul.f32 %v3213_v1, %v3213_v1  ;;  %v78_v5 = vmul.f32 %v3218_v2, %v3218_v2  ;;  %v3229_v6 = vld [vmem:[%s4641_s0 + $0x20] sm:$0xff]  ;;  %v3236_v8 = vld [vmem:[%s4641_s0 + $0x18] sm:$0xff]  ;;  %v3241_v9 = vld [vmem:[%s4641_s0 + $0x10] sm:$0xff] }
   0x3   :  { %v77_v7 = vmul.f32 %v3229_v6, %v3229_v6  ;;  %v3246_v10 = vld [vmem:[%s4641_s0] sm:$0xff]  ;;  %v76_v15 = vmul.f32 %v3236_v8, %v3236_v8  ;;  %v75_v16 = vmul.f32 %v3241_v9, %v3241_v9  ;;  %v3261_v17 = vld [vmem:[%s4641_s0 + $0x8] sm:$0xff]  ;;  %v44_v24 = vld [vmem:[%s4642_s3 + $0x18] sm:$0xff] }
   0x4   :  { %v103_v11 = vsel %vm4646_vm0, %v80_v3, 0.0  ;;  %v97_v12 = vsel %vm4646_vm0, %v78_v5, 0.0  ;;  %2706 = vmatprep.mubr.msk.f32.mxu1 %vm4646_vm0, %v3246_v10  ;;  %v100_v13 = vsel %vm4646_vm0, %v79_v4, 0.0  ;;  %v74_v20 = vmul.f32 %v3261_v17, %v3261_v17  ;;  %v43_v25 = vld [vmem:[%s4642_s3 + $0x10] sm:$0xff]  ;;  %2698 = vmatprep.subr.mxu1 %v44_v24  ;;  %v42_v26 = vld [vmem:[%s4642_s3 + $0x8] sm:$0xff]  ;;  %v41_v27 = vld [vmem:[%s4642_s3] sm:$0xff] }
   0x5   :  { %104 = vadd.xlane.f32.xlu0 %v103_v11  ;;  %98 = vadd.xlane.f32.xlu1 %v97_v12  ;;  %v94_v14 = vsel %vm4646_vm0, %v77_v7, 0.0  ;;  %v91_v18 = vsel %vm4646_vm0, %v76_v15, 0.0  ;;  %v88_v19 = vsel %vm4646_vm0, %v75_v16, 0.0  ;;  %v73_v21 = vmul.f32 %v3246_v10, %v3246_v10  ;;  %v25_v61 = vld [vmem:[%s4643_s1] sm:$0xff]  ;;  %v28_v4 = vld [vmem:[%s4643_s1 + $0x18] sm:$0xff]  ;;  %v27_v5 = vld [vmem:[%s4643_s1 + $0x10] sm:$0xff] }
   0x6   :  { %v85_v22 = vsel %vm4646_vm0, %v74_v20, 0.0  ;;  %2699 = vmatpush3.msra.mxu1 %v44_v24  ;;  %vm259_vm1 = vcmp.gt.f32.partialorder %v25_v61, 0.0  ;;  %v26_v7 = vld [vmem:[%s4643_s1 + $0x8] sm:$0xff]  ;;  %vm262_vm5 = vcmp.gt.f32.partialorder %v28_v4, 0.0  ;;  %vm261_vm8 = vcmp.gt.f32.partialorder %v27_v5, 0.0  ;;  %v31_v12 = vld [vmem:[%s4643_s1 + $0x30] sm:$0xff] }
   0x7   :  { %v82_v23 = vsel %vm4646_vm0, %v73_v21, 0.0  ;;  %2700 = vmatprep.subr.mxu1 %v43_v25  ;;  %vm260_vm11 = vcmp.gt.f32.partialorder %v26_v7, 0.0 }
   0x8   :  { %2701 = vmatpush3.msra.mxu1 %v43_v25 }
   0x9   :  { %101 = vadd.xlane.f32.xlu0 %v100_v13  ;;  %95 = vadd.xlane.f32.xlu1 %v94_v14  ;;  %v29_v13 = vld [vmem:[%s4643_s1 + $0x20] sm:$0xff] }
   0xa   :  { %2702 = vmatprep.subr.mxu1 %v42_v26 }
   0xb   :  { %2703 = vmatpush3.msra.mxu1 %v42_v26 }
   0xc   :  { %2704 = vmatprep.subr.mxu1 %v41_v27 }
   0xd   :  { %92 = vadd.xlane.f32.xlu0 %v91_v18  ;;  %89 = vadd.xlane.f32.xlu1 %v88_v19 }
   0xe   :  { %2705 = vmatpush3.msra.mxu1 %v41_v27 }
   0xf   :  { %2707 = vmatmul.mubr.msk.f32.vlgmr.msra.gmra.mxu1 %vm4646_vm0, %v3261_v17 }
  0x10   :  { %2709 = vmatprep.mubr.msk.f32.mxu1 %vm4646_vm0, %v3241_v9 }
  0x11   :  { %86 = vadd.xlane.f32.xlu0 %v85_v22  ;;  %83 = vadd.xlane.f32.xlu1 %v82_v23 }
  0x13   :  { %2710 = vmatmul.mubr.msk.f32.gmra.mxu1 %vm4646_vm0, %v3236_v8 }
  0x14   :  { %2712 = vmatprep.mubr.msk.f32.mxu1 %vm4646_vm0, %v3229_v6 }
  0x17   :  { %2713 = vmatmul.mubr.msk.f32.gmra.mxu1 %vm4646_vm0, %v3218_v2 }
  0x18   :  { %2715 = vmatprep.mubr.msk.f32.mxu1 %vm4646_vm0, %v3213_v1 }
  0x1b   :  { %2716 = vmatmul.mubr.msk.f32.gmra.mxu1 %vm4646_vm0, %v3208_v0 }
  0x8e   :  { %v105_v28 = vpop.xlane.xlu0 %104  ;;  %v99_v29 = vpop.xlane.xlu1 %98 }
  0x8f   :  { %v113_v30 = vmax.f32 %v105_v28, 1e-16  ;;  %v111_v31 = vmax.f32 %v99_v29, 1e-16 }
  0x91   :  { %2954 = vrsqrt.f32 %v113_v30 }
  0x92   :  { %v102_v32 = vpop.xlane.xlu0 %101  ;;  %v96_v33 = vpop.xlane.xlu1 %95  ;;  %2956 = vrsqrt.f32 %v111_v31  ;;  %v40_v31 = vld [vmem:[%s4644_s2 + $0x38] sm:$0xff] }
  0x93   :  { %v112_v34 = vmax.f32 %v102_v32, 1e-16  ;;  %v110_v35 = vmax.f32 %v96_v33, 1e-16 }
  0x95   :  { %2958 = vrsqrt.f32 %v112_v34  ;;  %v39_v34 = vld [vmem:[%s4644_s2 + $0x30] sm:$0xff] }
  0x96   :  { %v93_v36 = vpop.xlane.xlu0 %92  ;;  %v90_v37 = vpop.xlane.xlu1 %89  ;;  %2960 = vrsqrt.f32 %v110_v35 }
  0x97   :  { %v109_v38 = vmax.f32 %v93_v36, 1e-16  ;;  %v108_v40 = vmax.f32 %v90_v37, 1e-16  ;;  %v38_v36 = vld [vmem:[%s4644_s2 + $0x28] sm:$0xff] }
  0x99   :  { %2962 = vrsqrt.f32 %v109_v38 }
  0x9a   :  { %v84_v39 = vpop.xlane.xlu1 %83  ;;  %v87_v42 = vpop.xlane.xlu0 %86 }
  0x9b   :  { %v106_v41 = vmax.f32 %v84_v39, 1e-16  ;;  %v107_v45 = vmax.f32 %v87_v42, 1e-16  ;;  %v36_v42 = vld [vmem:[%s4644_s2 + $0x18] sm:$0xff] }
  0x9d   :  { %2964 = vrsqrt.f32 %v106_v41 }
  0x9e   :  { %v2955_v43 = vpop.eup %2954  ;;  %2966 = vrsqrt.f32 %v108_v40  ;;  %v37_v40 = vld [vmem:[%s4644_s2 + $0x20] sm:$0xff] }
  0x9f   :  { %v129_v44 = vmul.f32 %v2955_v43, %v3208_v0  ;;  %v2957_v46 = vpop.eup %2956  ;;  %2968 = vrsqrt.f32 %v107_v45 }
  0xa0   :  { %v127_v49 = vmul.f32 %v2957_v46, %v3218_v2  ;;  %v3341_v2 = vand.u32 127, %v54_v62 }
  0xa1   :  { %2670 = vmatprep.subr.msk.mxu0 %vm4646_vm0, %v129_v44 }
  0xa2   :  { %v2959_v47 = vpop.eup %2958  ;;  %2671 = vmatpush3.xpose.msk.msra.mxu0 %vm4646_vm0, %v129_v44 }
  0xa3   :  { %v128_v48 = vmul.f32 %v2959_v47, %v3213_v1  ;;  %v2961_v50 = vpop.eup %2960  ;;  %v3339_v1 = vshrl.u32 %v54_v62, 7  ;;  %v35_v47 = vld [vmem:[%s4644_s2 + $0x10] sm:$0xff] }
  0xa4   :  { %v126_v51 = vmul.f32 %v2961_v50, %v3229_v6 }
  0xa5   :  { %2672 = vmatprep.subr.msk.mxu0 %vm4646_vm0, %v128_v48  ;;  %vm4647_vm4 = vcmp.ne.s32.totalorder %v3339_v1, %v3341_v2  ;;  %v3388_v15 = vadd.s32 56, %v3339_v1  ;;  %v3412_v20 = vadd.s32 40, %v3339_v1  ;;  %v3423_v22 = vadd.s32 32, %v3339_v1 }
  0xa6   :  { %2673 = vmatpush3.xpose.msk.msra.mxu0 %vm4646_vm0, %v128_v48  ;;  %v2963_v52 = vpop.eup %2962  ;;  %v3437_v24 = vadd.s32 24, %v3339_v1  ;;  %v3444_v25 = vadd.s32 16, %v3339_v1  ;;  %v3468_v28 = vadd.s32 8, %v3339_v1 }
  0xa7   :  { %2674 = vmatprep.subr.msk.mxu0 %vm4646_vm0, %v127_v49  ;;  %v125_v54 = vmul.f32 %v2963_v52, %v3236_v8  ;;  %v30_v8 = vld [vmem:[%s4643_s1 + $0x28] sm:$0xff] }
  0xa8   :  { %vm264_vm12 = vcmp.gt.f32.partialorder %v30_v8, 0.0 }
  0xaa   :  { %2675 = vmatpush3.xpose.msk.msra.mxu0 %vm4646_vm0, %v127_v49  ;;  %v2965_v53 = vpop.eup %2964 }
  0xab   :  { %2676 = vmatprep.subr.msk.mxu0 %vm4646_vm0, %v126_v51  ;;  %v2967_v55 = vpop.eup %2966  ;;  %v122_v56 = vmul.f32 %v2965_v53, %v3246_v10  ;;  %v32_v10 = vld [vmem:[%s4643_s1 + $0x38] sm:$0xff]  ;;  %v33_v53 = vld [vmem:[%s4644_s2] sm:$0xff] }
  0xac   :  { %v124_v57 = vmul.f32 %v2967_v55, %v3241_v9  ;;  %v2969_v58 = vpop.eup %2968 }
  0xad   :  { %2686 = vmatprep.mubr.msk.f32.mxu0 %vm4646_vm0, %v122_v56  ;;  %v123_v59 = vmul.f32 %v2969_v58, %v3261_v17  ;;  %v3400_v17 = vadd.s32 48, %v3339_v1 }
  0xae   :  { %2677 = vmatpush3.xpose.msk.msra.mxu0 %vm4646_vm0, %v126_v51 }
  0xaf   :  { %2678 = vmatprep.subr.msk.mxu0 %vm4646_vm0, %v125_v54 }
  0xb2   :  { %2679 = vmatpush3.xpose.msk.msra.mxu0 %vm4646_vm0, %v125_v54 }
  0xb3   :  { %2680 = vmatprep.subr.msk.mxu0 %vm4646_vm0, %v124_v57 }
  0xb6   :  { %2681 = vmatpush3.xpose.msk.msra.mxu0 %vm4646_vm0, %v124_v57 }
  0xb7   :  { %2682 = vmatprep.subr.msk.mxu0 %vm4646_vm0, %v123_v59 }
  0xba   :  { %2683 = vmatpush3.xpose.msk.msra.mxu0 %vm4646_vm0, %v123_v59 }
  0xbb   :  { %2684 = vmatprep.subr.msk.mxu0 %vm4646_vm0, %v122_v56 }
  0xbe   :  { %2685 = vmatpush3.xpose.msk.msra.mxu0 %vm4646_vm0, %v122_v56 }
  0xc1   :  { %2687 = vmatmul.mubr.msk.f32.vlgmr.msra.gmra.mxu0 %vm4646_vm0, %v123_v59 }
  0xc2   :  { %2689 = vmatprep.mubr.msk.f32.mxu0 %vm4646_vm0, %v124_v57 }
  0xc5   :  { %2690 = vmatmul.mubr.msk.f32.gmra.mxu0 %vm4646_vm0, %v125_v54 }
  0xc6   :  { %2692 = vmatprep.mubr.msk.f32.mxu0 %vm4646_vm0, %v126_v51 }
  0xc9   :  { %2693 = vmatmul.mubr.msk.f32.gmra.mxu0 %vm4646_vm0, %v127_v49 }
  0xca   :  { %2695 = vmatprep.mubr.msk.f32.mxu0 %vm4646_vm0, %v128_v48  ;;  %v34_v48 = vld [vmem:[%s4644_s2 + $0x8] sm:$0xff] }
  0xcd   :  { %2696 = vmatmul.mubr.msk.f32.gmra.mxu0 %vm4646_vm0, %v129_v44  ;;  %vm265_vm0 = vcmp.gt.f32.partialorder %v31_v12, 0.0 }
 0x181   :  { %v3329_v60 = vpop.f32.mrf.mxu0 }
 0x182   :  { %vm4653_vm14 = vcmp.ge.f32.partialorder %v3329_v60, 0.1 }
 0x183   :  { %v3334_v63 = vpop.f32.mrf.mxu0 }
 0x184   :  { %vm4648_vm2 = vcmp.ge.f32.partialorder %v3334_v63, 0.1 }
 0x185   :  { %v3337_v0 = vpop.f32.mrf.mxu0  ;;  %vm275_vm3 = vmand %vm259_vm1, %vm4648_vm2  ;;  %vm266_vm1 = vcmp.gt.f32.partialorder %v32_v10, 0.0 }
 0x186   :  { %vm4650_vm6 = vcmp.ge.f32.partialorder %v3337_v0, 0.1  ;;  %vm283_vm7 = vmand %vm275_vm3, %vm4647_vm4  ;;  %vm263_vm4 = vcmp.gt.f32.partialorder %v29_v13, 0.0 }
 0x187   :  { %v3343_v3 = vpop.f32.mrf.mxu0  ;;  %v3374_v11 = vsel %vm283_vm7, %v3334_v63, 0.0  ;;  %vm3394_vm15 = vmand %vm262_vm5, %vm4650_vm6  ;;  %vm72_vm6 = vcmp.ne.s32.totalorder %v3388_v15, %v3341_v2 }
 0x188   :  { %vm4649_vm9 = vcmp.ge.f32.partialorder %v3343_v3, 0.1  ;;  %2734 = vmatprep.mubr.msk.f32.mxu1 %vm4652_vm10, %v3374_v11  ;;  %vm71_vm10 = vcmp.ne.s32.totalorder %v3400_v17, %v3341_v2 }
 0x189   :  { %v3355_v6 = vpop.f32.mrf.mxu0  ;;  %vm3405_vm7 = vmand %vm261_vm8, %vm4649_vm9 }
 0x18a   :  { %vm4651_vm13 = vcmp.ge.f32.partialorder %v3355_v6, 0.1  ;;  %vm3428_vm9 = vmand %vm260_vm11, %vm4653_vm14 }
 0x18b   :  { %v3367_v9 = vpop.f32.mrf.mxu0  ;;  %vm3416_vm5 = vmand %vm264_vm12, %vm4651_vm13 }
 0x18c   :  { %vm4654_vm2 = vcmp.ge.f32.partialorder %v3367_v9, 0.1 }
 0x18d   :  { %v3385_v14 = vpop.f32.mrf.mxu0  ;;  %vm3448_vm11 = vmand %vm263_vm4, %vm4654_vm2  ;;  %vm4656_vm2 = vcmp.ne.s32.totalorder %v3437_v24, %v3341_v2 }
 0x18e   :  { %vm274_vm3 = vcmp.ge.f32.partialorder %v3385_v14, 0.1 }
 0x18f   :  { %v3409_v19 = vpop.f32.mrf.mxu0  ;;  %vm282_vm12 = vmand %vm266_vm1, %vm274_vm3  ;;  %vm70_vm1 = vcmp.ne.s32.totalorder %v3412_v20, %v3341_v2 }
 0x190   :  { %vm4655_vm8 = vcmp.ge.f32.partialorder %v3409_v19, 0.1  ;;  %vm290_vm14 = vmand %vm282_vm12, %vm72_vm6 }
 0x191   :  { %vm281_vm13 = vmand %vm265_vm0, %vm4655_vm8  ;;  %vm4658_vm0 = vcmp.ne.s32.totalorder %v3423_v22, %v3341_v2  ;;  %v3460_v27 = vsel %vm290_vm14, %v3385_v14, 0.0  ;;  %vm4679_vm8 = vcmask 523264  }
 0x192   :  { %vm289_vm4 = vmand %vm281_vm13, %vm71_vm10  ;;  %v482_v29 = vsel %vm4679_vm8, %v3460_v27, 0.0  ;;  %vm4657_vm13 = vcmp.ne.s32.totalorder %v3444_v25, %v3341_v2 }
 0x193   :  { %v3473_v30 = vsel %vm289_vm4, %v3409_v19, 0.0  ;;  %vm288_vm14 = vmand %vm3416_vm5, %vm70_vm1  ;;  %483 = vadd.xlane.f32.xlu0 %v482_v29  ;;  %vm4659_vm4 = vcmp.ne.s32.totalorder %v3468_v28, %v3341_v2 }
 0x194   :  { %vm4680_vm12 = vmmov %vm4679_vm8  ;;  %v3488_v33 = vsel %vm288_vm14, %v3355_v6, 0.0  ;;  %vm306_vm14 = vcmp.gt.f32.partialorder %v40_v31, 0.0 }
 0x195   :  { %v479_v32 = vsel %vm4680_vm12, %v3473_v30, 0.0  ;;  %vm287_vm5 = vmand %vm3448_vm11, %vm4658_vm0  ;;  %v476_v37 = vsel %vm4680_vm12, %v3488_v33, 0.0 }
 0x196   :  { %480 = vadd.xlane.f32.xlu1 %v479_v32  ;;  %v3499_v35 = vsel %vm287_vm5, %v3367_v9, 0.0  ;;  %vm286_vm8 = vmand %vm3394_vm15, %vm4656_vm2  ;;  %vm305_vm5 = vcmp.gt.f32.partialorder %v39_v34, 0.0  ;;  %vm304_vm2 = vcmp.gt.f32.partialorder %v38_v36, 0.0 }
 0x197   :  { %vm285_vm11 = vmand %vm3405_vm7, %vm4657_vm13  ;;  %477 = vadd.xlane.f32.xlu0 %v476_v37  ;;  %v3521_v39 = vsel %vm286_vm8, %v3337_v0, 0.0  ;;  %vm4683_vm13 = vcmask 523264  }
 0x198   :  { %vm4681_vm15 = vmmov %vm4680_vm12  ;;  %v3527_v41 = vsel %vm285_vm11, %v3343_v3, 0.0  ;;  %vm4682_vm12 = vcmp.ge.f32.partialorder %v3409_v19, 0.1  ;;  %v470_v43 = vsel %vm4683_vm13, %v3521_v39, 0.0  ;;  %vm4684_vm11 = vcmp.ge.f32.partialorder %v3355_v6, 0.1 }
 0x199   :  { %v473_v38 = vsel %vm4681_vm15, %v3499_v35, 0.0  ;;  %vm284_vm7 = vmand %vm3428_vm9, %vm4659_vm4  ;;  %vm303_vm9 = vcmp.gt.f32.partialorder %v37_v40, 0.0 }
 0x19a   :  { %474 = vadd.xlane.f32.xlu1 %v473_v38  ;;  %vm314_vm8 = vmand %vm306_vm14, %vm274_vm3  ;;  %v3552_v46 = vsel %vm284_vm7, %v3329_v60, 0.0  ;;  %vm302_vm3 = vcmp.gt.f32.partialorder %v36_v42, 0.0  ;;  %vm4691_vm7 = vcmp.ge.f32.partialorder %v3337_v0, 0.1 }
 0x19b   :  { %vm313_vm15 = vmand %vm305_vm5, %vm4682_vm12  ;;  %471 = vadd.xlane.f32.xlu0 %v470_v43  ;;  %4688 = vst [vmem:[#allocation2_spill] sm:$0xff] %v3552_v46  ;;  %vm4690_vm5 = vcmask 523264  }
 0x19c   :  { %vm3545_vm0 = vmand %vm304_vm2, %vm4684_vm11  ;;  %v464_v49 = vsel %vm4690_vm5, %v3552_v46, 0.0  ;;  %vm4697_vm11 = vcmp.ne.s32.totalorder %v3423_v22, %v3341_v2 }
 0x19d   :  { %vm4687_vm4 = vmmov %vm4683_vm13 }
 0x19e   :  { %v467_v45 = vsel %vm4687_vm4, %v3527_v41, 0.0  ;;  %vm322_vm2 = vmand %vm314_vm8, %vm72_vm6  ;;  %vm4689_vm4 = vcmp.ge.f32.partialorder %v3367_v9, 0.1  ;;  %vm301_vm6 = vcmp.gt.f32.partialorder %v35_v47, 0.0 }
 0x19f   :  { %468 = vadd.xlane.f32.xlu1 %v467_v45  ;;  %vm321_vm13 = vmand %vm313_vm15, %vm71_vm10  ;;  %465 = vadd.xlane.f32.xlu0 %v464_v49  ;;  %v3579_v52 = vsel %vm322_vm2, %v3385_v14, 0.0  ;;  %vm300_vm10 = vcmp.gt.f32.partialorder %v34_v48, 0.0 }
 0x1a0   :  { %vm311_vm14 = vmand %vm303_vm9, %vm4689_vm4  ;;  %4695 = vst [vmem:[#allocation3_spill] sm:$0xff] %v3579_v52  ;;  %v3585_v54 = vsel %vm321_vm13, %v3409_v19, 0.0 }
 0x1a1   :  { %vm3572_vm12 = vmand %vm302_vm3, %vm4691_vm7  ;;  %4696 = vst [vmem:[#allocation4_spill] sm:$0xff] %v3585_v54  ;;  %vm4698_vm3 = vcmp.ge.f32.partialorder %v3343_v3, 0.1  ;;  %vm299_vm7 = vcmp.gt.f32.partialorder %v33_v53, 0.0 }
 0x1a2   :  { %vm4694_vm8 = vmmov %vm4690_vm5 }
 0x1a3   :  { %v461_v51 = vsel %vm4694_vm8, %v3374_v11, 0.0  ;;  %vm320_vm15 = vmand %vm3545_vm0, %vm70_vm1  ;;  %vm4706_vm0 = vcmp.ne.s32.totalorder %v3437_v24, %v3341_v2 }
 0x1a4   :  { %462 = vadd.xlane.f32.xlu1 %v461_v51  ;;  %vm319_vm9 = vmand %vm311_vm14, %vm4697_vm11  ;;  %v3608_v58 = vsel %vm320_vm15, %v3355_v6, 0.0 }
 0x1a5   :  { %vm309_vm2 = vmand %vm301_vm6, %vm4698_vm3  ;;  %4704 = vst [vmem:[#allocation5_spill] sm:$0xff] %v3608_v58  ;;  %v3611_v59 = vsel %vm319_vm9, %v3367_v9, 0.0  ;;  %vm4707_vm6 = vcmp.ne.s32.totalorder %v3444_v25, %v3341_v2 }
 0x1a6   :  { %vm4699_vm4 = vmmov %vm4690_vm5  ;;  %vm4700_vm5 = vcmp.ge.f32.partialorder %v3329_v60, 0.1  ;;  %4705 = vst [vmem:[#allocation6_spill] sm:$0xff] %v3611_v59 }
 0x1a7   :  { %v687_v55 = vsel %vm4699_vm4, %v3579_v52, 0.0  ;;  %vm3601_vm13 = vmand %vm300_vm10, %vm4700_vm5  ;;  %vm4708_vm10 = vcmp.ge.f32.partialorder %v3334_v63, 0.1 }
 0x1a8   :  { %688 = vadd.xlane.f32.xlu0 %v687_v55  ;;  %vm4703_vm1 = vmmov %vm4699_vm4 }
 0x1a9   :  { %v684_v57 = vsel %vm4703_vm1, %v3585_v54, 0.0  ;;  %vm318_vm14 = vmand %vm3572_vm12, %vm4706_vm0  ;;  %vm4713_vm12 = vcmp.ne.s32.totalorder %v3468_v28, %v3341_v2 }
 0x1aa   :  { %685 = vadd.xlane.f32.xlu1 %v684_v57  ;;  %vm317_vm8 = vmand %vm309_vm2, %vm4707_vm6  ;;  %v3628_v4 = vsel %vm318_vm14, %v3337_v0, 0.0  ;;  %vm4714_vm2 = vcmp.ne.s32.totalorder %v3339_v1, %v3341_v2  ;;  %v3655_v2 = vpop.f32.mrf.mxu1 }
 0x1ab   :  { %vm307_vm11 = vmand %vm299_vm7, %vm4708_vm10  ;;  %4711 = vst [vmem:[#allocation7_spill] sm:$0xff] %v3628_v4  ;;  %v3631_v5 = vsel %vm317_vm8, %v3343_v3, 0.0 }
 0x1ac   :  { %vm4709_vm15 = vmmov %vm4703_vm1  ;;  %4712 = vst [vmem:[#allocation8_spill] sm:$0xff] %v3631_v5  ;;  %v3657_v9 = vpop.f32.mrf.mxu1 }
 0x1ad   :  { %v681_v61 = vsel %vm4709_vm15, %v3608_v58, 0.0  ;;  %vm4710_vm9 = vmmov %vm4703_vm1 }
 0x1ae   :  { %682 = vadd.xlane.f32.xlu0 %v681_v61  ;;  %v678_v62 = vsel %vm4710_vm9, %v3611_v59, 0.0  ;;  %vm316_vm3 = vmand %vm3601_vm13, %vm4713_vm12  ;;  %v3659_v10 = vpop.f32.mrf.mxu1 }
 0x1af   :  { %679 = vadd.xlane.f32.xlu1 %v678_v62  ;;  %vm315_vm4 = vmand %vm307_vm11, %vm4714_vm2  ;;  %v3646_v3 = vsel %vm316_vm3, %v3329_v60, 0.0 }
 0x1b0   :  { %vm4715_vm5 = vmmov %vm4703_vm1  ;;  %4717 = vst [vmem:[#allocation9_spill] sm:$0xff] %v3646_v3  ;;  %v3649_v7 = vsel %vm315_vm4, %v3334_v63, 0.0  ;;  %v3661_v14 = vpop.f32.mrf.mxu1 }
 0x1b1   :  { %v675_v6 = vsel %vm4715_vm5, %v3628_v4, 0.0  ;;  %vm4716_vm7 = vmmov %vm4703_vm1  ;;  %4718 = vst [vmem:[#allocation10_spill] sm:$0xff] %v3649_v7  ;;  %v666_v1 = vsel %vm4703_vm1, %v3649_v7, 0.0 }
 0x1b2   :  { %676 = vadd.xlane.f32.xlu0 %v675_v6  ;;  %v672_v0 = vsel %vm4716_vm7, %v3631_v5, 0.0  ;;  %vm4719_vm13 = vmmov %vm4703_vm1  ;;  %v3663_v18 = vpop.f32.mrf.mxu1 }
 0x1b3   :  { %673 = vadd.xlane.f32.xlu1 %v672_v0  ;;  %v669_v8 = vsel %vm4719_vm13, %v3646_v3, 0.0  ;;  %vm4720_vm0 = vmmov %vm4703_vm1  ;;  %vm4735_vm1 = vcmask 261120  }
 0x1b4   :  { %v3665_v23 = vpop.f32.mrf.mxu1  ;;  %vm4721_vm14 = vmmov %vm4720_vm0 }
 0x1b5   :  { %vm4722_vm6 = vmmov %vm4720_vm0 }
 0x1b6   :  { %670 = vadd.xlane.f32.xlu0 %v669_v8  ;;  %v3667_v28 = vpop.f32.mrf.mxu1  ;;  %vm4723_vm8 = vmmov %vm4720_vm0 }
 0x1b7   :  { %667 = vadd.xlane.f32.xlu1 %v666_v1  ;;  %vm4724_vm10 = vmmov %vm4720_vm0 }
 0x1b8   :  { %v451_v38 = vpop.f32.mrf.mxu1  ;;  %vm4725_vm11 = vmmov %vm4720_vm0 }
 0x1b9   :  { %vm4726_vm15 = vmmov %vm4720_vm0 }
 0x1ba   :  { %vm4727_vm9 = vmmov %vm4720_vm0 }
 0x1bb   :  { %vm4728_vm12 = vmmov %vm4720_vm0 }
 0x1bc   :  { %vm4729_vm3 = vmmov %vm4720_vm0 }
 0x1bd   :  { %vm4730_vm2 = vmmov %vm4720_vm0 }
 0x1be   :  { %vm4731_vm4 = vmmov %vm4720_vm0 }
 0x1bf   :  { %vm4732_vm5 = vmmov %vm4720_vm0 }
 0x1c0   :  { %vm4733_vm7 = vmmov %vm4720_vm0 }
 0x1c1   :  { %vm4734_vm13 = vmmov %vm4720_vm0 }
 0x21c   :  { %v484_v60 = vpop.xlane.xlu0 %483 }
 0x21d   :  { %v492_v12 = vadd.f32 1.0, %v484_v60 }
 0x21f   :  { %v481_v13 = vpop.xlane.xlu1 %480  ;;  %2970 = vrsqrt.f32 %v492_v12 }
 0x220   :  { %v491_v63 = vadd.f32 1.0, %v481_v13  ;;  %v478_v15 = vpop.xlane.xlu0 %477 }
 0x221   :  { %v490_v16 = vadd.f32 1.0, %v478_v15 }
 0x222   :  { %2972 = vrsqrt.f32 %v491_v63 }
 0x223   :  { %v475_v17 = vpop.xlane.xlu1 %474  ;;  %2974 = vrsqrt.f32 %v490_v16 }
 0x224   :  { %v489_v19 = vadd.f32 1.0, %v475_v17  ;;  %v472_v20 = vpop.xlane.xlu0 %471 }
 0x225   :  { %v488_v21 = vadd.f32 1.0, %v472_v20 }
 0x226   :  { %2976 = vrsqrt.f32 %v489_v19 }
 0x227   :  { %2978 = vrsqrt.f32 %v488_v21 }
 0x228   :  { %v469_v22 = vpop.xlane.xlu1 %468  ;;  %v466_v25 = vpop.xlane.xlu0 %465 }
 0x229   :  { %v487_v24 = vadd.f32 1.0, %v469_v22  ;;  %v486_v26 = vadd.f32 1.0, %v466_v25 }
 0x22b   :  { %2980 = vrsqrt.f32 %v487_v24 }
 0x22c   :  { %2982 = vrsqrt.f32 %v486_v26  ;;  %v3669_v32 = vpop.eup %2970 }
 0x22d   :  { %v463_v29 = vpop.xlane.xlu1 %462  ;;  %v3675_v37 = vmul.f32 %v3669_v32, %v3667_v28 }
 0x22e   :  { %v485_v31 = vadd.f32 1.0, %v463_v29 }
 0x22f   :  { %v3671_v36 = vpop.eup %2972  ;;  %2718 = vmatprep.subr.mxu1 %v3675_v37 }
 0x230   :  { %2984 = vrsqrt.f32 %v485_v31  ;;  %v3678_v43 = vmul.f32 %v3671_v36, %v451_v38  ;;  %v3681_v45 = vpop.eup %2974  ;;  %2719 = vmatpush3.msra.mxu1 %v3675_v37 }
 0x231   :  { %v689_v34 = vpop.xlane.xlu0 %688  ;;  %v3688_v49 = vmul.f32 %v3681_v45, %v3663_v18 }
 0x232   :  { %v697_v40 = vadd.f32 1.0, %v689_v34  ;;  %2720 = vmatprep.subr.mxu1 %v3678_v43 }
 0x233   :  { %v686_v42 = vpop.xlane.xlu1 %685  ;;  %v3684_v48 = vpop.eup %2976  ;;  %2721 = vmatpush3.msra.mxu1 %v3678_v43 }
 0x234   :  { %v696_v44 = vadd.f32 1.0, %v686_v42  ;;  %2986 = vrsqrt.f32 %v697_v40  ;;  %v3693_v53 = vmul.f32 %v3684_v48, %v3665_v23  ;;  %2722 = vmatprep.subr.mxu1 %v3688_v49  ;;  %v3697_v56 = vpop.eup %2978 }
 0x235   :  { %2723 = vmatpush3.msra.mxu1 %v3688_v49  ;;  %v3705_v0 = vmul.f32 %v3697_v56, %v3659_v10 }
 0x236   :  { %2988 = vrsqrt.f32 %v696_v44  ;;  %2724 = vmatprep.subr.mxu1 %v3693_v53  ;;  %v3831_v44 = vld [vmem:[%s4642_s3 + $0x28] sm:$0xff] }
 0x237   :  { %v683_v47 = vpop.xlane.xlu0 %682  ;;  %2725 = vmatpush3.msra.mxu1 %v3693_v53 }
 0x238   :  { %v695_v50 = vadd.f32 1.0, %v683_v47  ;;  %v680_v51 = vpop.xlane.xlu1 %679  ;;  %v3700_v61 = vpop.eup %2980  ;;  %2726 = vmatprep.subr.mxu1 %v3705_v0 }
 0x239   :  { %v694_v55 = vadd.f32 1.0, %v680_v51  ;;  %v3710_v1 = vmul.f32 %v3700_v61, %v3661_v14  ;;  %v3713_v60 = vpop.eup %2982  ;;  %2727 = vmatpush3.msra.mxu1 %v3705_v0 }
 0x23a   :  { %2990 = vrsqrt.f32 %v695_v50  ;;  %v3721_v16 = vmul.f32 %v3713_v60, %v3655_v2 }
 0x23b   :  { %2992 = vrsqrt.f32 %v694_v55  ;;  %v677_v57 = vpop.xlane.xlu0 %676  ;;  %2728 = vmatprep.subr.mxu1 %v3710_v1 }
 0x23c   :  { %v693_v62 = vadd.f32 1.0, %v677_v57  ;;  %v674_v6 = vpop.xlane.xlu1 %673  ;;  %2729 = vmatpush3.msra.mxu1 %v3710_v1 }
 0x23d   :  { %v692_v8 = vadd.f32 1.0, %v674_v6  ;;  %v3716_v13 = vpop.eup %2984  ;;  %2730 = vmatprep.subr.mxu1 %v3721_v16 }
 0x23e   :  { %2994 = vrsqrt.f32 %v693_v62  ;;  %v3726_v19 = vmul.f32 %v3716_v13, %v3657_v9  ;;  %2731 = vmatpush3.msra.mxu1 %v3721_v16 }
 0x23f   :  { %2996 = vrsqrt.f32 %v692_v8  ;;  %v671_v12 = vpop.xlane.xlu0 %670 }
 0x240   :  { %v691_v63 = vadd.f32 1.0, %v671_v12  ;;  %v668_v15 = vpop.xlane.xlu1 %667  ;;  %2732 = vmatprep.subr.mxu1 %v3726_v19 }
 0x241   :  { %v690_v17 = vadd.f32 1.0, %v668_v15  ;;  %v3729_v20 = vpop.eup %2986  ;;  %2733 = vmatpush3.msra.mxu1 %v3726_v19 }
 0x242   :  { %2998 = vrsqrt.f32 %v691_v63  ;;  %v3737_v22 = vmul.f32 %v3729_v20, %v3667_v28  ;;  %2735 = vmatmul.mubr.msk.f32.vlgmr.msra.gmra.mxu1 %vm4720_vm0, %v3552_v46  ;;  %vm4736_vm0 = vmmov %vm4735_vm1 }
 0x243   :  { %3000 = vrsqrt.f32 %v690_v17  ;;  %v3732_v21 = vpop.eup %2988  ;;  %2737 = vmatprep.mubr.msk.f32.mxu1 %vm4721_vm14, %v3527_v41  ;;  %vm4737_vm14 = vmmov %vm4736_vm0 }
 0x244   :  { %v3741_v24 = vmul.f32 %v3732_v21, %v451_v38  ;;  %2746 = vmatprep.subr.mxu1 %v3737_v22 }
 0x245   :  { %2747 = vmatpush3.msra.mxu1 %v3737_v22 }
 0x246   :  { %2748 = vmatprep.subr.mxu1 %v3741_v24  ;;  %2738 = vmatmul.mubr.msk.f32.gmra.mxu1 %vm4722_vm6, %v3521_v39  ;;  %vm4738_vm6 = vmmov %vm4736_vm0 }
 0x247   :  { %v3746_v25 = vpop.eup %2990  ;;  %2749 = vmatpush3.msra.mxu1 %v3741_v24  ;;  %2740 = vmatprep.mubr.msk.f32.mxu1 %vm4723_vm8, %v3499_v35  ;;  %vm4739_vm8 = vmmov %vm4736_vm0 }
 0x248   :  { %v3751_v26 = vpop.eup %2992  ;;  %v3756_v28 = vmul.f32 %v3746_v25, %v3663_v18 }
 0x249   :  { %v3761_v29 = vmul.f32 %v3751_v26, %v3665_v23 }
 0x24a   :  { %2750 = vmatprep.subr.mxu1 %v3756_v28  ;;  %2741 = vmatmul.mubr.msk.f32.gmra.mxu1 %vm4724_vm10, %v3488_v33  ;;  %vm4740_vm10 = vmmov %vm4736_vm0 }
 0x24b   :  { %v3766_v31 = vpop.eup %2994  ;;  %2751 = vmatpush3.msra.mxu1 %v3756_v28  ;;  %2743 = vmatprep.mubr.msk.f32.mxu1 %vm4725_vm11, %v3473_v30  ;;  %vm4741_vm11 = vmmov %vm4736_vm0 }
 0x24c   :  { %v3771_v18 = vpop.eup %2996  ;;  %2752 = vmatprep.subr.mxu1 %v3761_v29  ;;  %v709_v23 = vmul.f32 %v3766_v31, %v3659_v10 }
 0x24d   :  { %2753 = vmatpush3.msra.mxu1 %v3761_v29  ;;  %v3779_v34 = vmul.f32 %v3771_v18, %v3661_v14  ;;  %v3824_v14 = vld [vmem:[%s4642_s3 + $0x30] sm:$0xff] }
 0x24e   :  { %2754 = vmatprep.subr.mxu1 %v709_v23  ;;  %2744 = vmatmul.mubr.msk.f32.gmra.mxu1 %vm4726_vm15, %v3460_v27  ;;  %vm4742_vm15 = vmmov %vm4736_vm0 }
 0x24f   :  { %v2999_v38 = vpop.eup %2998  ;;  %2755 = vmatpush3.msra.mxu1 %v709_v23  ;;  %2762 = vmatprep.mubr.msk.f32.mxu1 %vm4727_vm9, %v3649_v7  ;;  %v3851_v7 = vld [vmem:[%s4642_s3 + $0x20] ss:$0 sm:$0xff]  ;;  %vm4743_vm9 = vmmov %vm4736_vm0 }
 0x250   :  { %v3001_v40 = vpop.eup %3000  ;;  %2756 = vmatprep.subr.mxu1 %v3779_v34  ;;  %v707_v10 = vmul.f32 %v2999_v38, %v3655_v2  ;;  %v3810_v2 = vld [vmem:[%s4642_s3 + $0x40] sm:$0xff] }
 0x251   :  { %2757 = vmatpush3.msra.mxu1 %v3779_v34  ;;  %v706_v42 = vmul.f32 %v3001_v40, %v3657_v9  ;;  %v3817_v9 = vld [vmem:[%s4642_s3 + $0x38] sm:$0xff] }
 0x252   :  { %2758 = vmatprep.subr.mxu1 %v707_v10 }
 0x253   :  { %2759 = vmatpush3.msra.mxu1 %v707_v10 }
 0x254   :  { %2760 = vmatprep.subr.mxu1 %v706_v42 }
 0x255   :  { %2761 = vmatpush3.msra.mxu1 %v706_v42 }
 0x256   :  { %2763 = vmatmul.mubr.msk.f32.vlgmr.msra.gmra.mxu1 %vm4728_vm12, %v3646_v3  ;;  %2944 = vmatprep.subr.mxu1 %v3810_v2  ;;  %vm4744_vm12 = vmmov %vm4736_vm0 }
 0x257   :  { %2765 = vmatprep.mubr.msk.f32.mxu1 %vm4729_vm3, %v3631_v5  ;;  %2948 = vmatpush3.msra.mxu1 %v3810_v2  ;;  %vm4745_vm3 = vmmov %vm4736_vm0 }
 0x258   :  { %2945 = vmatprep.subr.mxu1 %v3817_v9 }
 0x259   :  { %2949 = vmatpush3.msra.mxu1 %v3817_v9 }
 0x25a   :  { %2766 = vmatmul.mubr.msk.f32.gmra.mxu1 %vm4730_vm2, %v3628_v4  ;;  %2946 = vmatprep.subr.mxu1 %v3824_v14  ;;  %vm4746_vm2 = vmmov %vm4736_vm0 }
 0x25b   :  { %2768 = vmatprep.mubr.msk.f32.mxu1 %vm4731_vm4, %v3611_v59  ;;  %2950 = vmatpush3.msra.mxu1 %v3824_v14  ;;  %vm4747_vm4 = vmmov %vm4736_vm0 }
 0x25c   :  { %2947 = vmatprep.subr.mxu1 %v3831_v44 }
 0x25d   :  { %2951 = vmatpush3.msra.mxu1 %v3831_v44 }
 0x25e   :  { %2769 = vmatmul.mubr.msk.f32.gmra.mxu1 %vm4732_vm5, %v3608_v58  ;;  %vm4748_vm5 = vmmov %vm4736_vm0 }
 0x25f   :  { %2771 = vmatprep.mubr.msk.f32.mxu1 %vm4733_vm7, %v3585_v54  ;;  %vm4749_vm7 = vmmov %vm4736_vm0 }
 0x262   :  { %2772 = vmatmul.mubr.msk.f32.gmra.mxu1 %vm4734_vm13, %v3579_v52  ;;  %vm4750_vm13 = vmmov %vm4736_vm0 }
 0x302   :  { %v3835_v47 = vpop.f32.mrf.mxu1 }
 0x304   :  { %v3837_v50 = vpop.f32.mrf.mxu1 }
 0x306   :  { %v3839_v51 = vpop.f32.mrf.mxu1 }
 0x308   :  { %v3841_v55 = vpop.f32.mrf.mxu1 }
 0x30a   :  { %v2742_v57 = vpop.f32.mrf.mxu1 }
 0x30c   :  { %v3843_v62 = vpop.f32.mrf.mxu1 }
 0x30e   :  { %v2745_v6 = vpop.f32.mrf.mxu1 }
 0x30f   :  { %v635_v8 = vadd.f32 %v2745_v6, %v3675_v37 }
 0x310   :  { %v629_v12 = vpop.f32.mrf.mxu1 }
 0x311   :  { %v645_v63 = vmul.f32 %v3669_v32, %v635_v8  ;;  %v630_v15 = vadd.f32 %v629_v12, %v3678_v43 }
 0x313   :  { %v644_v3 = vmul.f32 %v3671_v36, %v630_v15  ;;  %v657_v54 = vadd.f32 %v3851_v7, %v645_v63 }
 0x315   :  { %v656_v4 = vadd.f32 %v3851_v7, %v644_v3  ;;  %v3858_v12 = vmax.f32 %v657_v54, 0.0 }
 0x316   :  { %v2764_v17 = vpop.f32.mrf.mxu1 }
 0x317   :  { %v810_v5 = vadd.f32 %v2764_v17, %v707_v10  ;;  %v3856_v32 = vmax.f32 %v656_v4, 0.0 }
 0x318   :  { %v804_v59 = vpop.f32.mrf.mxu1 }
 0x319   :  { %v844_v37 = vmul.f32 %v2999_v38, %v810_v5  ;;  %v805_v6 = vadd.f32 %v804_v59, %v706_v42  ;;  %2847 = vmatprep.mubr.msk.f32.mxu1 %vm4735_vm1, %v3856_v32  ;;  %vm4751_vm1 = vmmov %vm4736_vm0 }
 0x31a   :  { %v2767_v52 = vpop.f32.mrf.mxu1  ;;  %2848 = vmatmul.mubr.msk.f32.vlgmr.msra.gmra.mxu1 %vm4736_vm0, %v3858_v12 }
 0x31b   :  { %v843_v43 = vmul.f32 %v3001_v40, %v805_v6  ;;  %v820_v8 = vadd.f32 %v2767_v52, %v709_v23  ;;  %v852_v58 = vadd.f32 %v3851_v7, %v844_v37 }
 0x31c   :  { %v814_v46 = vpop.f32.mrf.mxu1 }
 0x31d   :  { %v851_v36 = vadd.f32 %v3851_v7, %v843_v43  ;;  %v846_v10 = vmul.f32 %v3766_v31, %v820_v8  ;;  %v815_v63 = vadd.f32 %v814_v46, %v3779_v34  ;;  %v3872_v5 = vmax.f32 %v852_v58, 0.0 }
 0x31e   :  { %v2770_v59 = vpop.f32.mrf.mxu1 }
 0x31f   :  { %v3868_v4 = vmax.f32 %v851_v36, 0.0  ;;  %v845_v52 = vmul.f32 %v3771_v18, %v815_v63  ;;  %v830_v54 = vadd.f32 %v2770_v59, %v3756_v28  ;;  %v854_v3 = vadd.f32 %v3851_v7, %v846_v10 }
 0x320   :  { %v824_v31 = vpop.f32.mrf.mxu1  ;;  %v625_v36 = vadd.f32 %v2742_v57, %v3688_v49  ;;  %v620_v59 = vadd.f32 %v3843_v62, %v3693_v53  ;;  %v610_v53 = vadd.f32 %v3841_v55, %v3710_v1  ;;  %v876_v1 = vmul.f32 %v3872_v5, %v3872_v5 }
 0x321   :  { %v853_v46 = vadd.f32 %v3851_v7, %v845_v52  ;;  %v848_v23 = vmul.f32 %v3746_v25, %v830_v54  ;;  %v825_v34 = vadd.f32 %v824_v31, %v3761_v29  ;;  %2850 = vmatprep.mubr.msk.f32.mxu1 %vm4737_vm14, %v3868_v4  ;;  %v3886_v40 = vmax.f32 %v854_v3, 0.0  ;;  %vm4752_vm14 = vmmov %vm4736_vm0 }
 0x322   :  { %v2773_v38 = vpop.f32.mrf.mxu1  ;;  %2851 = vmatmul.mubr.msk.f32.gmra.mxu1 %vm4738_vm6, %v3872_v5  ;;  %v615_v52 = vadd.f32 %v3839_v51, %v3705_v0  ;;  %v643_v54 = vmul.f32 %v3681_v45, %v625_v36  ;;  %v642_v62 = vmul.f32 %v3684_v48, %v620_v59  ;;  %v605_v0 = vadd.f32 %v3835_v47, %v3721_v16  ;;  %vm4753_vm6 = vmmov %vm4736_vm0 }
 0x323   :  { %v3882_v18 = vmax.f32 %v853_v46, 0.0  ;;  %v847_v58 = vmul.f32 %v3751_v26, %v825_v34  ;;  %v840_v28 = vadd.f32 %v2773_v38, %v3737_v22  ;;  %v856_v42 = vadd.f32 %v3851_v7, %v848_v23 }
 0x324   :  { %v834_v25 = vpop.f32.mrf.mxu1  ;;  %v878_v31 = vmul.f32 %v3886_v40, %v3886_v40  ;;  %v641_v45 = vmul.f32 %v3697_v56, %v615_v52  ;;  %v655_v51 = vadd.f32 %v3851_v7, %v643_v54  ;;  %v600_v48 = vadd.f32 %v3837_v50, %v3726_v19 }
 0x325   :  { %v855_v29 = vadd.f32 %v3851_v7, %v847_v58  ;;  %v850_v15 = vmul.f32 %v3729_v20, %v840_v28  ;;  %v835_v17 = vadd.f32 %v834_v25, %v3741_v24  ;;  %2853 = vmatprep.mubr.msk.f32.mxu1 %vm4739_vm8, %v3882_v18  ;;  %v3900_v6 = vmax.f32 %v856_v42, 0.0  ;;  %vm4754_vm8 = vmmov %vm4736_vm0 }
 0x326   :  { %2854 = vmatmul.mubr.msk.f32.gmra.mxu1 %vm4740_vm10, %v3886_v40  ;;  %v877_v23 = vmul.f32 %v3882_v18, %v3882_v18  ;;  %v916_v34 = vsel %vm4749_vm7, %v878_v31, 0.0  ;;  %v640_v55 = vmul.f32 %v3700_v61, %v610_v53  ;;  %v654_v38 = vadd.f32 %v3851_v7, %v642_v62  ;;  %vm4755_vm10 = vmmov %vm4736_vm0 }
 0x327   :  { %v3896_v26 = vmax.f32 %v855_v29, 0.0  ;;  %v858_v22 = vadd.f32 %v3851_v7, %v850_v15  ;;  %v849_v37 = vmul.f32 %v3732_v21, %v835_v17  ;;  %v880_v63 = vmul.f32 %v3900_v6, %v3900_v6  ;;  %vm4764_vm7 = vmmov %vm4736_vm0 }
 0x328   :  { %v913_v16 = vsel %vm4750_vm13, %v877_v23, 0.0  ;;  %v875_v56 = vmul.f32 %v3868_v4, %v3868_v4  ;;  %v639_v47 = vmul.f32 %v3713_v60, %v605_v0  ;;  %v653_v58 = vadd.f32 %v3851_v7, %v641_v45  ;;  %vm4765_vm13 = vmmov %vm4736_vm0 }
 0x329   :  { %v3902_v43 = vmax.f32 %v858_v22, 0.0  ;;  %v857_v20 = vadd.f32 %v3851_v7, %v849_v37  ;;  %2856 = vmatprep.mubr.msk.f32.mxu1 %vm4741_vm11, %v3896_v26  ;;  %v879_v57 = vmul.f32 %v3896_v26, %v3896_v26  ;;  %v922_v3 = vsel %vm4747_vm4, %v880_v63, 0.0  ;;  %vm4756_vm11 = vmmov %vm4736_vm0 }
 0x32a   :  { %2857 = vmatmul.mubr.msk.f32.gmra.mxu1 %vm4742_vm15, %v3900_v6  ;;  %v3956_v28 = vmax.f32 %v655_v51, 0.0  ;;  %v910_v42 = vsel %vm4751_vm1, %v876_v1, 0.0  ;;  %v874_v19 = vmul.f32 %v3858_v12, %v3858_v12  ;;  %v638_v61 = vmul.f32 %v3716_v13, %v600_v48  ;;  %vm4757_vm15 = vmmov %vm4736_vm0 }
 0x32b   :  { %v3909_v24 = vmax.f32 %v857_v20, 0.0  ;;  %v882_v8 = vmul.f32 %v3902_v43, %v3902_v43  ;;  %v919_v46 = vsel %vm4748_vm5, %v879_v57, 0.0  ;;  %v652_v50 = vadd.f32 %v3851_v7, %v640_v55  ;;  %vm4762_vm4 = vmmov %vm4736_vm0 }
 0x32c   :  { %v3963_v25 = vmax.f32 %v654_v38, 0.0  ;;  %v907_v29 = vsel %vm4736_vm0, %v875_v56, 0.0  ;;  %v873_v60 = vmul.f32 %v3856_v32, %v3856_v32  ;;  %v651_v15 = vadd.f32 %v3851_v7, %v639_v47  ;;  %vm4763_vm5 = vmmov %vm4736_vm0 }
 0x32d   :  { %2859 = vmatprep.mubr.msk.f32.mxu1 %vm4743_vm9, %v3909_v24  ;;  %v928_v21 = vsel %vm4744_vm12, %v882_v8, 0.0  ;;  %v881_v10 = vmul.f32 %v3909_v24, %v3909_v24  ;;  %v3969_v17 = vmax.f32 %v653_v58, 0.0  ;;  %v904_v22 = vsel %vm4752_vm14, %v874_v19, 0.0  ;;  %vm4758_vm9 = vmmov %vm4736_vm0 }
 0x32e   :  { %929 = vadd.xlane.f32.xlu0 %v928_v21  ;;  %2860 = vmatmul.mubr.msk.f32.gmra.mxu1 %vm4745_vm3, %v3902_v43  ;;  %v872_v13 = vmul.f32 %v3956_v28, %v3956_v28  ;;  %v650_v37 = vadd.f32 %v3851_v7, %v638_v61  ;;  %v3975_v20 = vmax.f32 %v652_v50, 0.0  ;;  %v901_v8 = vsel %vm4753_vm6, %v873_v60, 0.0  ;;  %vm4759_vm12 = vmmov %vm4736_vm0 }
 0x32f   :  { %v925_v49 = vsel %vm4746_vm2, %v881_v10, 0.0  ;;  %v871_v36 = vmul.f32 %v3963_v25, %v3963_v25  ;;  %v3980_v21 = vmax.f32 %v651_v15, 0.0  ;;  %v870_v63 = vmul.f32 %v3969_v17, %v3969_v17  ;;  %vm4760_vm3 = vmmov %vm4736_vm0 }
 0x330   :  { %926 = vadd.xlane.f32.xlu1 %v925_v49  ;;  %v898_v10 = vsel %vm4754_vm8, %v872_v13, 0.0  ;;  %v3985_v59 = vmax.f32 %v650_v37, 0.0  ;;  %v869_v49 = vmul.f32 %v3975_v20, %v3975_v20  ;;  %vm4761_vm2 = vmmov %vm4736_vm0 }
 0x331   :  { %v895_v7 = vsel %vm4755_vm10, %v871_v36, 0.0  ;;  %v892_v57 = vsel %vm4756_vm11, %v870_v63, 0.0  ;;  %v868_v52 = vmul.f32 %v3980_v21, %v3980_v21  ;;  %vm4766_vm1 = vmmov %vm4736_vm0 }
 0x332   :  { %923 = vadd.xlane.f32.xlu0 %v922_v3  ;;  %v889_v54 = vsel %vm4757_vm15, %v869_v49, 0.0  ;;  %v867_v3 = vmul.f32 %v3985_v59, %v3985_v59  ;;  %vm4767_vm14 = vmmov %vm4736_vm0 }
 0x333   :  { %v886_v31 = vsel %vm4758_vm9, %v868_v52, 0.0  ;;  %vm4768_vm6 = vmmov %vm4736_vm0 }
 0x334   :  { %920 = vadd.xlane.f32.xlu1 %v919_v46  ;;  %v883_v53 = vsel %vm4759_vm12, %v867_v3, 0.0  ;;  %vm4769_vm8 = vmmov %vm4736_vm0 }
 0x335   :  { %vm4770_vm10 = vmmov %vm4736_vm0 }
 0x336   :  { %917 = vadd.xlane.f32.xlu0 %v916_v34  ;;  %vm4771_vm11 = vmmov %vm4736_vm0 }
 0x337   :  { %vm4772_vm15 = vmmov %vm4736_vm0 }
 0x338   :  { %914 = vadd.xlane.f32.xlu1 %v913_v16  ;;  %vm4773_vm9 = vmmov %vm4736_vm0 }
 0x339   :  { %vm4774_vm12 = vmmov %vm4736_vm0 }
 0x33a   :  { %911 = vadd.xlane.f32.xlu0 %v910_v42 }
 0x33c   :  { %908 = vadd.xlane.f32.xlu1 %v907_v29 }
 0x33e   :  { %905 = vadd.xlane.f32.xlu0 %v904_v22 }
 0x340   :  { %902 = vadd.xlane.f32.xlu1 %v901_v8 }
 0x342   :  { %899 = vadd.xlane.f32.xlu0 %v898_v10 }
 0x344   :  { %896 = vadd.xlane.f32.xlu1 %v895_v7 }
 0x346   :  { %893 = vadd.xlane.f32.xlu0 %v892_v57 }
 0x348   :  { %890 = vadd.xlane.f32.xlu1 %v889_v54 }
 0x34a   :  { %887 = vadd.xlane.f32.xlu0 %v886_v31 }
 0x34c   :  { %884 = vadd.xlane.f32.xlu1 %v883_v53 }
 0x3b7   :  { %v930_v62 = vpop.xlane.xlu0 %929 }
 0x3b8   :  { %v946_v46 = vmax.f32 %v930_v62, 1e-16 }
 0x3b9   :  { %v927_v23 = vpop.xlane.xlu1 %926 }
 0x3ba   :  { %3002 = vrsqrt.f32 %v946_v46  ;;  %v945_v0 = vmax.f32 %v927_v23, 1e-16 }
 0x3bb   :  { %v924_v45 = vpop.xlane.xlu0 %923 }
 0x3bc   :  { %3004 = vrsqrt.f32 %v945_v0  ;;  %v944_v51 = vmax.f32 %v924_v45, 1e-16 }
 0x3bd   :  { %v921_v34 = vpop.xlane.xlu1 %920 }
 0x3be   :  { %3006 = vrsqrt.f32 %v944_v51  ;;  %v943_v1 = vmax.f32 %v921_v34, 1e-16 }
 0x3bf   :  { %v918_v48 = vpop.xlane.xlu0 %917 }
 0x3c0   :  { %3008 = vrsqrt.f32 %v943_v1  ;;  %v942_v38 = vmax.f32 %v918_v48, 1e-16 }
 0x3c1   :  { %v915_v55 = vpop.xlane.xlu1 %914 }
 0x3c2   :  { %3010 = vrsqrt.f32 %v942_v38  ;;  %v941_v56 = vmax.f32 %v915_v55, 1e-16 }
 0x3c3   :  { %v912_v58 = vpop.xlane.xlu0 %911 }
 0x3c4   :  { %3012 = vrsqrt.f32 %v941_v56  ;;  %v940_v50 = vmax.f32 %v912_v58, 1e-16 }
 0x3c5   :  { %v909_v16 = vpop.xlane.xlu1 %908 }
 0x3c6   :  { %3014 = vrsqrt.f32 %v940_v50 }
 0x3c7   :  { %v3003_v47 = vpop.eup %3002  ;;  %v906_v37 = vpop.xlane.xlu0 %905 }
 0x3c8   :  { %v3999_v42 = vmul.f32 %v3003_v47, %v3902_v43  ;;  %v939_v43 = vmax.f32 %v909_v16, 1e-16  ;;  %v938_v8 = vmax.f32 %v906_v37, 1e-16 }
 0x3c9   :  { %v3005_v19 = vpop.eup %3004  ;;  %v903_v61 = vpop.xlane.xlu1 %902 }
 0x3ca   :  { %2774 = vmatprep.subr.msk.mxu0 %vm4760_vm3, %v3999_v42  ;;  %v4004_v29 = vmul.f32 %v3005_v19, %v3909_v24  ;;  %3016 = vrsqrt.f32 %v939_v43  ;;  %v937_v63 = vmax.f32 %v903_v61, 1e-16  ;;  %vm4775_vm3 = vmmov %vm4736_vm0 }
 0x3cb   :  { %v3007_v60 = vpop.eup %3006  ;;  %2775 = vmatpush3.xpose.msk.msra.mxu0 %vm4761_vm2, %v3999_v42  ;;  %3018 = vrsqrt.f32 %v938_v8  ;;  %v900_v52 = vpop.xlane.xlu0 %899  ;;  %vm4776_vm2 = vmmov %vm4736_vm0 }
 0x3cc   :  { %2776 = vmatprep.subr.msk.mxu0 %vm4762_vm4, %v4004_v29  ;;  %v4011_v22 = vmul.f32 %v3007_v60, %v3900_v6  ;;  %vm4777_vm4 = vmmov %vm4736_vm0 }
 0x3cd   :  { %v897_v15 = vpop.xlane.xlu1 %896  ;;  %v3009_v13 = vpop.eup %3008 }
 0x3ce   :  { %v4018_v36 = vmul.f32 %v3009_v13, %v3896_v26  ;;  %v936_v26 = vmax.f32 %v900_v52, 1e-16 }
 0x3cf   :  { %2777 = vmatpush3.xpose.msk.msra.mxu0 %vm4763_vm5, %v4004_v29  ;;  %v3011_v10 = vpop.eup %3010  ;;  %v894_v62 = vpop.xlane.xlu0 %893  ;;  %vm4778_vm5 = vmmov %vm4736_vm0 }
 0x3d0   :  { %2778 = vmatprep.subr.msk.mxu0 %vm4764_vm7, %v4011_v22  ;;  %v4025_v49 = vmul.f32 %v3011_v10, %v3886_v40  ;;  %v935_v40 = vmax.f32 %v897_v15, 1e-16  ;;  %vm4779_vm7 = vmmov %vm4736_vm0 }
 0x3d1   :  { %v891_v24 = vpop.xlane.xlu1 %890  ;;  %v3013_v57 = vpop.eup %3012 }
 0x3d2   :  { %v4032_v54 = vmul.f32 %v3013_v57, %v3882_v18  ;;  %v934_v18 = vmax.f32 %v894_v62, 1e-16  ;;  %v933_v0 = vmax.f32 %v891_v24, 1e-16 }
 0x3d3   :  { %2779 = vmatpush3.xpose.msk.msra.mxu0 %vm4765_vm13, %v4011_v22  ;;  %v3015_v3 = vpop.eup %3014  ;;  %v888_v1 = vpop.xlane.xlu0 %887  ;;  %vm4780_vm13 = vmmov %vm4736_vm0 }
 0x3d4   :  { %2780 = vmatprep.subr.msk.mxu0 %vm4766_vm1, %v4018_v36  ;;  %v4039_v31 = vmul.f32 %v3015_v3, %v3872_v5  ;;  %vm4781_vm1 = vmmov %vm4736_vm0 }
 0x3d5   :  { %v885_v6 = vpop.xlane.xlu1 %884 }
 0x3d6   :  { %v931_v7 = vmax.f32 %v885_v6, 1e-16 }
 0x3d7   :  { %2781 = vmatpush3.xpose.msk.msra.mxu0 %vm4736_vm0, %v4018_v36  ;;  %v3017_v53 = vpop.eup %3016 }
 0x3d8   :  { %3020 = vrsqrt.f32 %v931_v7  ;;  %2782 = vmatprep.subr.msk.mxu0 %vm4767_vm14, %v4025_v49  ;;  %v971_v46 = vmul.f32 %v3017_v53, %v3868_v4  ;;  %v3019_v23 = vpop.eup %3018  ;;  %v932_v4 = vmax.f32 %v888_v1, 1e-16  ;;  %vm4782_vm14 = vmmov %vm4736_vm0 }
 0x3d9   :  { %3022 = vrsqrt.f32 %v937_v63  ;;  %v970_v45 = vmul.f32 %v3019_v23, %v3858_v12 }
 0x3da   :  { %3024 = vrsqrt.f32 %v936_v26  ;;  %v4814_v26 = vld [vmem:[#allocation2_spill] sm:$0xff] }
 0x3db   :  { %2783 = vmatpush3.xpose.msk.msra.mxu0 %vm4768_vm6, %v4025_v49  ;;  %3026 = vrsqrt.f32 %v935_v40  ;;  %vm4783_vm6 = vmmov %vm4736_vm0 }
 0x3dc   :  { %2784 = vmatprep.subr.msk.mxu0 %vm4769_vm8, %v4032_v54  ;;  %3028 = vrsqrt.f32 %v934_v18  ;;  %vm4784_vm8 = vmmov %vm4736_vm0 }
 0x3dd   :  { %3030 = vrsqrt.f32 %v933_v0  ;;  %v4820_v0 = vld [vmem:[#allocation5_spill] sm:$0xff] }
 0x3de   :  { %3032 = vrsqrt.f32 %v932_v4 }
 0x3df   :  { %2785 = vmatpush3.xpose.msk.msra.mxu0 %vm4770_vm10, %v4032_v54  ;;  %vm4785_vm10 = vmmov %vm4736_vm0 }
 0x3e0   :  { %2786 = vmatprep.subr.msk.mxu0 %vm4771_vm11, %v4039_v31  ;;  %vm4786_vm11 = vmmov %vm4736_vm0 }
 0x3e3   :  { %2787 = vmatpush3.xpose.msk.msra.mxu0 %vm4772_vm15, %v4039_v31  ;;  %vm4787_vm15 = vmmov %vm4736_vm0 }
 0x3e4   :  { %2788 = vmatprep.subr.msk.mxu0 %vm4773_vm9, %v971_v46  ;;  %vm4788_vm9 = vmmov %vm4736_vm0 }
 0x3e5   :  { %v3021_v5 = vpop.eup %3020 }
 0x3e6   :  { %v963_v51 = vmul.f32 %v3021_v5, %v3985_v59  ;;  %v3023_v34 = vpop.eup %3022 }
 0x3e7   :  { %2789 = vmatpush3.xpose.msk.msra.mxu0 %vm4774_vm12, %v971_v46  ;;  %v969_v48 = vmul.f32 %v3023_v34, %v3856_v32  ;;  %v3025_v55 = vpop.eup %3024  ;;  %vm4789_vm12 = vmmov %vm4736_vm0 }
 0x3e8   :  { %2790 = vmatprep.subr.msk.mxu0 %vm4775_vm3, %v970_v45  ;;  %2806 = vmatprep.mubr.msk.f32.mxu0 %vm4776_vm2, %v963_v51  ;;  %v968_v12 = vmul.f32 %v3025_v55, %v3956_v28  ;;  %v3027_v38 = vpop.eup %3026  ;;  %vm4790_vm3 = vmmov %vm4736_vm0  ;;  %v4823_v55 = vld [vmem:[#allocation7_spill] sm:$0xff] }
 0x3e9   :  { %v967_v16 = vmul.f32 %v3027_v38, %v3963_v25  ;;  %v3029_v56 = vpop.eup %3028  ;;  %vm4791_vm2 = vmmov %vm4736_vm0  ;;  %v4824_v38 = vld [vmem:[#allocation6_spill] sm:$0xff] }
 0x3ea   :  { %v966_v32 = vmul.f32 %v3029_v56, %v3969_v17  ;;  %v3031_v47 = vpop.eup %3030  ;;  %v4825_v56 = vld [vmem:[#allocation4_spill] sm:$0xff] }
 0x3eb   :  { %2791 = vmatpush3.xpose.msk.msra.mxu0 %vm4777_vm4, %v970_v45  ;;  %v965_v58 = vmul.f32 %v3031_v47, %v3975_v20  ;;  %v3033_v19 = vpop.eup %3032  ;;  %vm4792_vm4 = vmmov %vm4736_vm0 }
 0x3ec   :  { %2792 = vmatprep.subr.msk.mxu0 %vm4778_vm5, %v969_v48  ;;  %v964_v61 = vmul.f32 %v3033_v19, %v3980_v21  ;;  %vm4793_vm5 = vmmov %vm4736_vm0 }
 0x3ef   :  { %2793 = vmatpush3.xpose.msk.msra.mxu0 %vm4779_vm7, %v969_v48  ;;  %vm4794_vm7 = vmmov %vm4736_vm0 }
 0x3f0   :  { %2794 = vmatprep.subr.msk.mxu0 %vm4780_vm13, %v968_v12  ;;  %vm4795_vm13 = vmmov %vm4736_vm0 }
 0x3f3   :  { %2795 = vmatpush3.xpose.msk.msra.mxu0 %vm4781_vm1, %v968_v12  ;;  %vm4796_vm1 = vmmov %vm4736_vm0 }
 0x3f4   :  { %2796 = vmatprep.subr.msk.mxu0 %vm4736_vm0, %v967_v16 }
 0x3f7   :  { %2797 = vmatpush3.xpose.msk.msra.mxu0 %vm4782_vm14, %v967_v16  ;;  %vm4797_vm14 = vmmov %vm4736_vm0 }
 0x3f8   :  { %2798 = vmatprep.subr.msk.mxu0 %vm4783_vm6, %v966_v32  ;;  %vm4798_vm6 = vmmov %vm4736_vm0 }
 0x3fb   :  { %2799 = vmatpush3.xpose.msk.msra.mxu0 %vm4784_vm8, %v966_v32  ;;  %vm4799_vm8 = vmmov %vm4736_vm0 }
 0x3fc   :  { %2800 = vmatprep.subr.msk.mxu0 %vm4785_vm10, %v965_v58  ;;  %vm4800_vm10 = vmmov %vm4736_vm0 }
 0x3ff   :  { %2801 = vmatpush3.xpose.msk.msra.mxu0 %vm4786_vm11, %v965_v58  ;;  %vm4801_vm11 = vmmov %vm4736_vm0 }
 0x400   :  { %2802 = vmatprep.subr.msk.mxu0 %vm4787_vm15, %v964_v61  ;;  %vm4802_vm15 = vmmov %vm4736_vm0 }
 0x403   :  { %2803 = vmatpush3.xpose.msk.msra.mxu0 %vm4788_vm9, %v964_v61  ;;  %vm4803_vm9 = vmmov %vm4736_vm0 }
 0x404   :  { %2804 = vmatprep.subr.msk.mxu0 %vm4789_vm12, %v963_v51  ;;  %vm4804_vm12 = vmmov %vm4736_vm0 }
 0x407   :  { %2805 = vmatpush3.xpose.msk.msra.mxu0 %vm4790_vm3, %v963_v51  ;;  %vm4805_vm3 = vmmov %vm4736_vm0  ;;  %v4821_v51 = vld [vmem:[#allocation3_spill] sm:$0xff] }
 0x408   :  { %2830 = vmatprep.subr.mxu0 %v3810_v2 }
 0x40a   :  { %2807 = vmatmul.mubr.msk.f32.vlgmr.msra.gmra.mxu0 %vm4791_vm2, %v964_v61  ;;  %vm4806_vm2 = vmmov %vm4736_vm0 }
 0x40b   :  { %2809 = vmatprep.mubr.msk.f32.mxu0 %vm4792_vm4, %v965_v58  ;;  %2831 = vmatpush3.msra.mxu0 %v3810_v2  ;;  %vm4807_vm4 = vmmov %vm4736_vm0 }
 0x40c   :  { %2832 = vmatprep.subr.mxu0 %v3817_v9 }
 0x40d   :  { %2833 = vmatpush3.msra.mxu0 %v3817_v9 }
 0x40e   :  { %2810 = vmatmul.mubr.msk.f32.gmra.mxu0 %vm4793_vm5, %v966_v32  ;;  %2834 = vmatprep.subr.mxu0 %v3824_v14  ;;  %vm4808_vm5 = vmmov %vm4736_vm0 }
 0x40f   :  { %2812 = vmatprep.mubr.msk.f32.mxu0 %vm4794_vm7, %v967_v16  ;;  %2835 = vmatpush3.msra.mxu0 %v3824_v14  ;;  %vm4809_vm7 = vmmov %vm4736_vm0 }
 0x410   :  { %2836 = vmatprep.subr.mxu0 %v3831_v44 }
 0x411   :  { %2837 = vmatpush3.msra.mxu0 %v3831_v44 }
 0x412   :  { %2813 = vmatmul.mubr.msk.f32.gmra.mxu0 %vm4795_vm13, %v968_v12  ;;  %vm4810_vm13 = vmmov %vm4736_vm0 }
 0x413   :  { %2815 = vmatprep.mubr.msk.f32.mxu0 %vm4796_vm1, %v969_v48  ;;  %vm1172_vm1 = vcmp.gt.f32.partialorder %v3374_v11, 0.0 }
 0x416   :  { %2816 = vmatmul.mubr.msk.f32.gmra.mxu0 %vm4736_vm0, %v970_v45 }
 0x417   :  { %2818 = vmatprep.mubr.msk.f32.mxu0 %vm4797_vm14, %v971_v46 }
 0x41a   :  { %2819 = vmatmul.mubr.msk.f32.gmra.mxu0 %vm4798_vm6, %v4039_v31  ;;  %vm4811_vm6 = vcmask 523264  }
 0x41b   :  { %2821 = vmatprep.mubr.msk.f32.mxu0 %vm4799_vm8, %v4032_v54 }
 0x41e   :  { %2822 = vmatmul.mubr.msk.f32.gmra.mxu0 %vm4800_vm10, %v4025_v49 }
 0x41f   :  { %2824 = vmatprep.mubr.msk.f32.mxu0 %vm4801_vm11, %v4018_v36 }
 0x422   :  { %2825 = vmatmul.mubr.msk.f32.gmra.mxu0 %vm4802_vm15, %v4011_v22 }
 0x423   :  { %2827 = vmatprep.mubr.msk.f32.mxu0 %vm4803_vm9, %v4004_v29  ;;  %v3178_v29 = vmov 0  }
 0x426   :  { %2828 = vmatmul.mubr.msk.f32.gmra.mxu0 %vm4804_vm12, %v3999_v42 }
 0x427   :  { %2838 = vmatprep.mubr.msk.f32.mxu0 %vm4805_vm3, %v3985_v59 }
 0x42a   :  { %2839 = vmatmul.mubr.msk.f32.vlgmr.msra.gmra.mxu0 %vm4806_vm2, %v3980_v21 }
 0x42b   :  { %2841 = vmatprep.mubr.msk.f32.mxu0 %vm4807_vm4, %v3975_v20 }
 0x42e   :  { %2842 = vmatmul.mubr.msk.f32.gmra.mxu0 %vm4808_vm5, %v3969_v17  ;;  %vm1179_vm5 = vcmp.gt.f32.partialorder %v3460_v27, 0.0 }
 0x42f   :  { %2844 = vmatprep.mubr.msk.f32.mxu0 %vm4809_vm7, %v3963_v25 }
 0x432   :  { %2845 = vmatmul.mubr.msk.f32.gmra.mxu0 %vm4810_vm13, %v3956_v28 }
 0x4ca   :  { %v4117_v2 = vpop.f32.mrf.mxu0 }
 0x4cc   :  { %v1093_v9 = vpop.f32.mrf.mxu0 }
 0x4cd   :  { %vm1180_vm0 = vcmp.ge.f32.partialorder %v1093_v9, 0.1 }
 0x4ce   :  { %vm1188_vm14 = vmand %vm1172_vm1, %vm1180_vm0  ;;  %v4120_v14 = vpop.f32.mrf.mxu0  ;;  %vm1177_vm1 = vcmp.gt.f32.partialorder %v3488_v33, 0.0 }
 0x4cf   :  { %v4122_v44 = vsel %vm1188_vm14, %v1093_v9, 0.0  ;;  %v4828_v9 = vld [vmem:[#allocation8_spill] sm:$0xff] }
 0x4d0   :  { %v4124_v20 = vpop.f32.mrf.mxu0  ;;  %2878 = vmatprep.mubr.msk.f32.mxu1 %vm4811_vm6, %v4122_v44 }
 0x4d2   :  { %v2814_v25 = vpop.f32.mrf.mxu0 }
 0x4d3   :  { %vm1185_vm13 = vcmp.ge.f32.partialorder %v2814_v25, 0.1 }
 0x4d4   :  { %v4128_v17 = vpop.f32.mrf.mxu0  ;;  %vm1193_vm0 = vmand %vm1177_vm1, %vm1185_vm13  ;;  %vm1174_vm1 = vcmp.gt.f32.partialorder %v3527_v41, 0.0 }
 0x4d5   :  { %vm1184_vm14 = vcmp.ge.f32.partialorder %v4128_v17, 0.1  ;;  %v4155_v57 = vsel %vm1193_vm0, %v2814_v25, 0.0  ;;  %vm4813_vm13 = vmmov %vm4811_vm6 }
 0x4d6   :  { %v2817_v28 = vpop.f32.mrf.mxu0 }
 0x4d7   :  { %vm1187_vm4 = vcmp.ge.f32.partialorder %v2817_v28, 0.1 }
 0x4d8   :  { %v4130_v21 = vpop.f32.mrf.mxu0  ;;  %vm1195_vm7 = vmand %vm1179_vm5, %vm1187_vm4  ;;  %vm1182_vm4 = vcmp.ge.f32.partialorder %v4124_v20, 0.1 }
 0x4d9   :  { %v4149_v7 = vsel %vm1195_vm7, %v2817_v28, 0.0  ;;  %vm1181_vm7 = vcmp.ge.f32.partialorder %v4117_v2, 0.1  ;;  %vm1190_vm0 = vmand %vm1174_vm1, %vm1182_vm4  ;;  %vm1211_vm4 = vcmp.gt.f32.partialorder %v4821_v51, 0.0 }
 0x4da   :  { %v2820_v59 = vpop.f32.mrf.mxu0  ;;  %v1514_v49 = vsel %vm4811_vm6, %v4149_v7, 0.0  ;;  %v4184_v3 = vsel %vm1190_vm0, %v4124_v20, 0.0 }
 0x4db   :  { %vm1213_vm3 = vcmp.ge.f32.partialorder %v2820_v59, 0.1 }
 0x4dc   :  { %v1133_v42 = vpop.f32.mrf.mxu0  ;;  %v1221_v6 = vsel %vm1213_vm3, 1, %v3178_v29 }
 0x4dd   :  { %vm1212_vm2 = vcmp.ge.f32.partialorder %v1133_v42, 0.1 }
 0x4de   :  { %v2823_v11 = vpop.f32.mrf.mxu0  ;;  %v1220_v63 = vsel %vm1212_vm2, 1, %v3178_v29  ;;  %vm1175_vm2 = vcmp.gt.f32.partialorder %v3521_v39, 0.0 }
 0x4df   :  { %vm1215_vm8 = vcmp.ge.f32.partialorder %v2823_v11, 0.1 }
 0x4e0   :  { %v1143_v50 = vpop.f32.mrf.mxu0  ;;  %v1223_v60 = vsel %vm1215_vm8, 1, %v3178_v29  ;;  %vm1176_vm8 = vcmp.gt.f32.partialorder %v3499_v35, 0.0 }
 0x4e1   :  { %1234 = vrot.lane.b32.xlu1 %v1223_v60, %s3179_s25  ;;  %vm1214_vm12 = vcmp.ge.f32.partialorder %v1143_v50, 0.1  ;;  %v4834_v60 = vld [vmem:[#allocation10_spill] sm:$0xff] }
 0x4e2   :  { %v2826_v15 = vpop.f32.mrf.mxu0  ;;  %v1222_v10 = vsel %vm1214_vm12, 1, %v3178_v29  ;;  %vm1178_vm12 = vcmp.gt.f32.partialorder %v3473_v30, 0.0 }
 0x4e3   :  { %vm1217_vm10 = vcmp.ge.f32.partialorder %v2826_v15, 0.1  ;;  %1278 = vrot.lane.b32.xlu0 %v2826_v15, %s3179_s25 }
 0x4e4   :  { %v1153_v43 = vpop.f32.mrf.mxu0  ;;  %v1225_v22 = vsel %vm1217_vm10, 1, %v3178_v29  ;;  %vm1186_vm10 = vcmp.ge.f32.partialorder %v4130_v21, 0.1 }
 0x4e5   :  { %1238 = vrot.lane.b32.xlu1 %v1225_v22, %s3179_s25  ;;  %vm1216_vm15 = vcmp.ge.f32.partialorder %v1153_v43, 0.1  ;;  %vm1194_vm3 = vmand %vm1178_vm12, %vm1186_vm10 }
 0x4e6   :  { %v2829_v13 = vpop.f32.mrf.mxu0  ;;  %v1224_v8 = vsel %vm1216_vm15, 1, %v3178_v29  ;;  %vm1183_vm15 = vcmp.ge.f32.partialorder %v4120_v14, 0.1  ;;  %v4172_v52 = vsel %vm1194_vm3, %v4130_v21, 0.0  ;;  %vm1209_vm3 = vcmp.gt.f32.partialorder %v4820_v0, 0.0  ;;  %v4831_v21 = vld [vmem:[#allocation9_spill] sm:$0xff] }
 0x4e7   :  { %vm1219_vm11 = vcmp.ge.f32.partialorder %v2829_v13, 0.1  ;;  %1276 = vrot.lane.b32.xlu0 %v1153_v43, %s3179_s25  ;;  %vm1191_vm5 = vmand %vm1175_vm2, %vm1183_vm15 }
 0x4e8   :  { %v1163_v37 = vpop.f32.mrf.mxu0  ;;  %v1227_v24 = vsel %vm1219_vm11, 1, %v3178_v29  ;;  %vm1192_vm11 = vmand %vm1176_vm8, %vm1184_vm14  ;;  %v4176_v30 = vsel %vm1191_vm5, %v4120_v14, 0.0  ;;  %vm1173_vm14 = vcmp.gt.f32.partialorder %v4814_v26, 0.0 }
 0x4e9   :  { %1282 = vrot.lane.b32.xlu1 %v2829_v13, %s3179_s25  ;;  %vm1218_vm9 = vcmp.ge.f32.partialorder %v1163_v37, 0.1  ;;  %v4164_v33 = vsel %vm1192_vm11, %v4128_v17, 0.0 }
 0x4ea   :  { %v1226_v36 = vsel %vm1218_vm9, 1, %v3178_v29  ;;  %vm4812_vm9 = vmmov %vm4811_vm6  ;;  %v1505_v35 = vsel %vm4813_vm13, %v4164_v33, 0.0 }
 0x4eb   :  { %1242 = vrot.lane.b32.xlu0 %v1227_v24, %s3179_s25  ;;  %v1508_v27 = vsel %vm4812_vm9, %v4155_v57, 0.0  ;;  %vm1189_vm6 = vmand %vm1173_vm14, %vm1181_vm7  ;;  %vm1207_vm14 = vcmp.gt.f32.partialorder %v4823_v55, 0.0 }
 0x4ec   :  { %vm4815_vm8 = vmmov %vm4812_vm9  ;;  %v4187_v41 = vsel %vm1189_vm6, %v4117_v2, 0.0  ;;  %vm1208_vm6 = vcmp.gt.f32.partialorder %v4824_v38, 0.0 }
 0x4ed   :  { %1236 = vrot.lane.b32.xlu1 %v1224_v8, %s3179_s25  ;;  %v1511_v39 = vsel %vm4815_vm8, %v4172_v52, 0.0  ;;  %vm4816_vm10 = vmmov %vm4815_vm8 }
 0x4ee   :  { %v1502_v54 = vsel %vm4816_vm10, %v4176_v30, 0.0  ;;  %vm4817_vm11 = vmmov %vm4815_vm8 }
 0x4ef   :  { %1280 = vrot.lane.b32.xlu0 %v1163_v37, %s3179_s25  ;;  %v1499_v40 = vsel %vm4817_vm11, %v4184_v3, 0.0  ;;  %vm4818_vm15 = vmmov %vm4815_vm8  ;;  %vm1210_vm11 = vcmp.gt.f32.partialorder %v4825_v56, 0.0 }
 0x4f0   :  { %v1496_v31 = vsel %vm4818_vm15, %v4187_v41, 0.0  ;;  %vm4819_vm9 = vmmov %vm4815_vm8 }
 0x4f1   :  { %1240 = vrot.lane.b32.xlu1 %v1226_v36, %s3179_s25  ;;  %v1493_v53 = vsel %vm4819_vm9, %v4122_v44, 0.0  ;;  %vm4822_vm0 = vmmov %vm4815_vm8 }
 0x4f3   :  { %1274 = vrot.lane.b32.xlu0 %v2823_v11, %s3179_s25 }
 0x4f5   :  { %1232 = vrot.lane.b32.xlu1 %v1222_v10, %s3179_s25  ;;  %v2840_v10 = vpop.f32.mrf.mxu0 }
 0x4f7   :  { %1272 = vrot.lane.b32.xlu0 %v1143_v50, %s3179_s25  ;;  %v1414_v26 = vpop.f32.mrf.mxu0 }
 0x4f9   :  { %1230 = vrot.lane.b32.xlu1 %v1221_v6, %s3179_s25 }
 0x4fb   :  { %1270 = vrot.lane.b32.xlu0 %v2820_v59, %s3179_s25 }
 0x4fd   :  { %1228 = vrot.lane.b32.xlu1 %v1220_v63, %s3179_s25 }
 0x501   :  { %1268 = vrot.lane.b32.xlu1 %v1133_v42, %s3179_s25 }
 0x51a   :  { %1515 = vadd.xlane.f32.xlu0 %v1514_v49 }
 0x51e   :  { %1509 = vadd.xlane.f32.xlu0 %v1508_v27 }
 0x522   :  { %1506 = vadd.xlane.f32.xlu0 %v1505_v35 }
 0x525   :  { %1512 = vadd.xlane.f32.xlu1 %v1511_v39 }
 0x526   :  { %1503 = vadd.xlane.f32.xlu0 %v1502_v54 }
 0x529   :  { %1500 = vadd.xlane.f32.xlu1 %v1499_v40  ;;  %v2849_v40 = vpop.f32.mrf.mxu1 }
 0x52a   :  { %1497 = vadd.xlane.f32.xlu0 %v1496_v31 }
 0x52d   :  { %1494 = vadd.xlane.f32.xlu1 %v1493_v53 }
 0x553   :  { %v1235_v62 = vpop.permute.xlu1 %1234 }
 0x554   :  { %vm1247_vm13 = vcmp.ne.s32.totalorder %v1235_v62, 0 }
 0x555   :  { %v1279_v18 = vpop.permute.xlu0 %1278  ;;  %vm1255_vm8 = vmand %vm1207_vm14, %vm1247_vm13 }
 0x556   :  { %vm4830_vm13 = vmmov %vm4822_vm0 }
 0x557   :  { %v1239_v46 = vpop.permute.xlu1 %1238 }
 0x558   :  { %vm1249_vm12 = vcmp.ne.s32.totalorder %v1239_v46, 0  ;;  %v2843_v46 = vpop.f32.mrf.mxu0 }
 0x559   :  { %v1277_v23 = vpop.permute.xlu0 %1276  ;;  %vm1257_vm2 = vmand %vm1209_vm3, %vm1249_vm12 }
 0x55a   :  { %v4202_v12 = vsel %vm1257_vm2, %v1279_v18, 0.0  ;;  %vm4826_vm12 = vmmov %vm4822_vm0  ;;  %v1424_v0 = vpop.f32.mrf.mxu0 }
 0x55b   :  { %v1283_v5 = vpop.permute.xlu1 %1282  ;;  %v1705_v47 = vsel %vm4826_vm12, %v4202_v12, 0.0  ;;  %vm4827_vm3 = vmmov %vm4822_vm0 }
 0x55c   :  { %vm4836_vm12 = vmmov %vm4827_vm3 }
 0x55d   :  { %v1243_v45 = vpop.permute.xlu0 %1242 }
 0x55e   :  { %vm1251_vm5 = vcmp.ne.s32.totalorder %v1243_v45, 0 }
 0x55f   :  { %vm1259_vm7 = vmand %vm1211_vm4, %vm1251_vm5  ;;  %v1237_v34 = vpop.permute.xlu1 %1236  ;;  %vm1206_vm4 = vcmp.gt.f32.partialorder %v4828_v9, 0.0 }
 0x560   :  { %v4197_v1 = vsel %vm1259_vm7, %v1283_v5, 0.0  ;;  %vm1248_vm1 = vcmp.ne.s32.totalorder %v1237_v34, 0  ;;  %vm4829_vm7 = vmmov %vm4822_vm0  ;;  %v1444_v34 = vpop.f32.mrf.mxu1 }
 0x561   :  { %v1281_v4 = vpop.permute.xlu0 %1280  ;;  %v1711_v48 = vsel %vm4822_vm0, %v4197_v1, 0.0  ;;  %vm1256_vm10 = vmand %vm1208_vm6, %vm1248_vm1  ;;  %vm1205_vm0 = vcmp.gt.f32.partialorder %v4831_v21, 0.0 }
 0x562   :  { %1712 = vadd.xlane.f32.xlu0 %v1711_v48  ;;  %v4215_v14 = vsel %vm1256_vm10, %v1277_v23, 0.0  ;;  %vm4832_vm6 = vmmov %vm4827_vm3 }
 0x563   :  { %v1241_v16 = vpop.permute.xlu1 %1240  ;;  %v1702_v17 = vsel %vm4830_vm13, %v4215_v14, 0.0 }
 0x564   :  { %vm1250_vm15 = vcmp.ne.s32.totalorder %v1241_v16, 0 }
 0x565   :  { %vm1258_vm9 = vmand %vm1210_vm11, %vm1250_vm15  ;;  %v1275_v32 = vpop.permute.xlu0 %1274  ;;  %vm1204_vm11 = vcmp.gt.f32.partialorder %v4834_v60, 0.0 }
 0x566   :  { %v4208_v58 = vsel %vm1255_vm8, %v1275_v32, 0.0  ;;  %1706 = vadd.xlane.f32.xlu0 %v1705_v47  ;;  %v4210_v19 = vsel %vm1258_vm9, %v1281_v4, 0.0  ;;  %vm4833_vm8 = vmmov %vm4827_vm3  ;;  %v2846_v4 = vpop.f32.mrf.mxu0 }
 0x567   :  { %v1233_v61 = vpop.permute.xlu1 %1232  ;;  %v1708_v2 = vsel %vm4827_vm3, %v4210_v19, 0.0  ;;  %v1699_v20 = vsel %vm4829_vm7, %v4208_v58, 0.0  ;;  %vm4835_vm9 = vmmov %vm4827_vm3 }
 0x568   :  { %vm1246_vm2 = vcmp.ne.s32.totalorder %v1233_v61, 0  ;;  %1709 = vadd.xlane.f32.xlu1 %v1708_v2  ;;  %v1434_v56 = vpop.f32.mrf.mxu0 }
 0x569   :  { %v1273_v44 = vpop.permute.xlu0 %1272  ;;  %vm1254_vm5 = vmand %vm1206_vm4, %vm1246_vm2 }
 0x56a   :  { %1700 = vadd.xlane.f32.xlu0 %v1699_v20  ;;  %v4221_v28 = vsel %vm1254_vm5, %v1273_v44, 0.0  ;;  %vm4837_vm2 = vmmov %vm4827_vm3 }
 0x56b   :  { %v1231_v25 = vpop.permute.xlu1 %1230  ;;  %v1696_v50 = vsel %vm4832_vm6, %v4221_v28, 0.0  ;;  %vm4838_vm4 = vmmov %vm4837_vm2 }
 0x56c   :  { %vm1245_vm1 = vcmp.ne.s32.totalorder %v1231_v25, 0  ;;  %1703 = vadd.xlane.f32.xlu1 %v1702_v17  ;;  %vm4839_vm5 = vmmov %vm4837_vm2 }
 0x56d   :  { %v1271_v59 = vpop.permute.xlu0 %1270  ;;  %vm1253_vm14 = vmand %vm1205_vm0, %vm1245_vm1 }
 0x56e   :  { %v4224_v42 = vsel %vm1253_vm14, %v1271_v59, 0.0  ;;  %vm4840_vm7 = vmmov %vm4837_vm2 }
 0x56f   :  { %v1229_v11 = vpop.permute.xlu1 %1228  ;;  %v1693_v29 = vsel %vm4833_vm8, %v4224_v42, 0.0  ;;  %vm4841_vm13 = vmmov %vm4837_vm2 }
 0x570   :  { %vm1244_vm10 = vcmp.ne.s32.totalorder %v1229_v11, 0  ;;  %1697 = vadd.xlane.f32.xlu1 %v1696_v50  ;;  %1694 = vadd.xlane.f32.xlu0 %v1693_v29  ;;  %vm4842_vm1 = vmmov %vm4837_vm2 }
 0x571   :  { %vm1252_vm15 = vmand %vm1204_vm11, %vm1244_vm10 }
 0x572   :  { %vm4843_vm0 = vmmov %vm4842_vm1 }
 0x573   :  { %v1269_v15 = vpop.permute.xlu1 %1268  ;;  %vm4844_vm14 = vmmov %vm4843_vm0 }
 0x574   :  { %v4231_v43 = vsel %vm1252_vm15, %v1269_v15, 0.0  ;;  %vm4845_vm6 = vmmov %vm4843_vm0 }
 0x575   :  { %v1690_v22 = vsel %vm4835_vm9, %v4231_v43, 0.0  ;;  %vm4846_vm8 = vmmov %vm4843_vm0  ;;  %vm1887_vm9 = vcmask 64512  }
 0x576   :  { %1691 = vadd.xlane.f32.xlu1 %v1690_v22  ;;  %vm4847_vm10 = vmmov %vm4843_vm0 }
 0x577   :  { %vm4848_vm11 = vmmov %vm4843_vm0 }
 0x578   :  { %vm4849_vm15 = vmmov %vm4843_vm0 }
 0x5a3   :  { %v1516_v13 = vpop.xlane.xlu0 %1515 }
 0x5a4   :  { %v1524_v37 = vadd.f32 1.0, %v1516_v13 }
 0x5a6   :  { %3034 = vrsqrt.f32 %v1524_v37 }
 0x5a7   :  { %v1510_v24 = vpop.xlane.xlu0 %1509 }
 0x5a8   :  { %v1522_v36 = vadd.f32 1.0, %v1510_v24 }
 0x5aa   :  { %3036 = vrsqrt.f32 %v1522_v36 }
 0x5ab   :  { %v1507_v8 = vpop.xlane.xlu0 %1506 }
 0x5ac   :  { %v1521_v63 = vadd.f32 1.0, %v1507_v8 }
 0x5ae   :  { %v1513_v6 = vpop.xlane.xlu1 %1512 }
 0x5af   :  { %v1523_v49 = vadd.f32 1.0, %v1513_v6  ;;  %v1504_v27 = vpop.xlane.xlu0 %1503 }
 0x5b0   :  { %v1520_v35 = vadd.f32 1.0, %v1504_v27 }
 0x5b1   :  { %3038 = vrsqrt.f32 %v1523_v49 }
 0x5b2   :  { %v1501_v39 = vpop.xlane.xlu1 %1500  ;;  %3040 = vrsqrt.f32 %v1521_v63 }
 0x5b3   :  { %v4235_v54 = vpop.eup %3034  ;;  %v1519_v31 = vadd.f32 1.0, %v1501_v39  ;;  %v1498_v53 = vpop.xlane.xlu0 %1497  ;;  %3042 = vrsqrt.f32 %v1520_v35 }
 0x5b4   :  { %v4238_v62 = vmul.f32 %v4235_v54, %v2849_v40  ;;  %v1518_v18 = vadd.f32 1.0, %v1498_v53 }
 0x5b5   :  { %3044 = vrsqrt.f32 %v1519_v31 }
 0x5b6   :  { %2862 = vmatprep.subr.mxu1 %v4238_v62  ;;  %v1495_v23 = vpop.xlane.xlu1 %1494  ;;  %3046 = vrsqrt.f32 %v1518_v18 }
 0x5b7   :  { %v1517_v5 = vadd.f32 1.0, %v1495_v23  ;;  %2863 = vmatpush3.msra.mxu1 %v4238_v62  ;;  %v4242_v45 = vpop.eup %3036 }
 0x5b8   :  { %v4253_v38 = vmul.f32 %v4242_v45, %v2846_v4 }
 0x5b9   :  { %3048 = vrsqrt.f32 %v1517_v5 }
 0x5be   :  { %v4244_v51 = vpop.eup %3038 }
 0x5bf   :  { %v4247_v48 = vmul.f32 %v4244_v51, %v1444_v34  ;;  %v4249_v55 = vpop.eup %3040 }
 0x5c0   :  { %v4255_v16 = vpop.eup %3042  ;;  %v4260_v32 = vmul.f32 %v4249_v55, %v1434_v56  ;;  %v51_v56 = vld [vmem:[%s4642_s3 + $0x50] sm:$0xff] }
 0x5c1   :  { %2864 = vmatprep.subr.mxu1 %v4247_v48  ;;  %v4267_v61 = vmul.f32 %v4255_v16, %v2843_v46 }
 0x5c2   :  { %2865 = vmatpush3.msra.mxu1 %v4247_v48  ;;  %v4262_v47 = vpop.eup %3044 }
 0x5c3   :  { %2866 = vmatprep.subr.mxu1 %v4253_v38  ;;  %v4269_v2 = vpop.eup %3046  ;;  %v4274_v9 = vmul.f32 %v4262_v47, %v1424_v0 }
 0x5c4   :  { %2867 = vmatpush3.msra.mxu1 %v4253_v38  ;;  %v4281_v20 = vmul.f32 %v4269_v2, %v2840_v10 }
 0x5c5   :  { %2868 = vmatprep.subr.mxu1 %v4260_v32 }
 0x5c6   :  { %2869 = vmatpush3.msra.mxu1 %v4260_v32  ;;  %v4276_v44 = vpop.eup %3048 }
 0x5c7   :  { %2870 = vmatprep.subr.mxu1 %v4267_v61  ;;  %v4286_v25 = vmul.f32 %v4276_v44, %v1414_v26 }
 0x5c8   :  { %2871 = vmatpush3.msra.mxu1 %v4267_v61 }
 0x5c9   :  { %2872 = vmatprep.subr.mxu1 %v4274_v9 }
 0x5ca   :  { %2873 = vmatpush3.msra.mxu1 %v4274_v9 }
 0x5cb   :  { %2874 = vmatprep.subr.mxu1 %v4281_v20 }
 0x5cc   :  { %2875 = vmatpush3.msra.mxu1 %v4281_v20 }
 0x5cd   :  { %2876 = vmatprep.subr.mxu1 %v4286_v25 }
 0x5ce   :  { %2877 = vmatpush3.msra.mxu1 %v4286_v25 }
 0x5cf   :  { %2879 = vmatmul.mubr.msk.f32.vlgmr.msra.gmra.mxu1 %vm4836_vm12, %v4187_v41  ;;  %v2852_v41 = vpop.f32.mrf.mxu1 }
 0x5d0   :  { %2881 = vmatprep.mubr.msk.f32.mxu1 %vm4827_vm3, %v4184_v3 }
 0x5d1   :  { %v1454_v3 = vpop.f32.mrf.mxu1 }
 0x5d3   :  { %2882 = vmatmul.mubr.msk.f32.gmra.mxu1 %vm4837_vm2, %v4176_v30  ;;  %v2855_v17 = vpop.f32.mrf.mxu1 }
 0x5d4   :  { %2884 = vmatprep.mubr.msk.f32.mxu1 %vm4838_vm4, %v4164_v33 }
 0x5d5   :  { %v1464_v59 = vpop.f32.mrf.mxu1 }
 0x5d7   :  { %2885 = vmatmul.mubr.msk.f32.gmra.mxu1 %vm4839_vm5, %v4155_v57  ;;  %v2858_v29 = vpop.f32.mrf.mxu1 }
 0x5d8   :  { %2887 = vmatprep.mubr.msk.f32.mxu1 %vm4840_vm7, %v4172_v52 }
 0x5d9   :  { %v1474_v22 = vpop.f32.mrf.mxu1 }
 0x5db   :  { %2888 = vmatmul.mubr.msk.f32.gmra.mxu1 %vm4841_vm13, %v4149_v7  ;;  %v2861_v36 = vpop.f32.mrf.mxu1 }
 0x5dc   :  { %2906 = vmatprep.mubr.msk.f32.mxu1 %vm4842_vm1, %v4231_v43 }
 0x5dd   :  { %v1484_v35 = vpop.f32.mrf.mxu1 }
 0x5eb   :  { %v1713_v21 = vpop.xlane.xlu0 %1712 }
 0x5ec   :  { %v1721_v30 = vadd.f32 1.0, %v1713_v21 }
 0x5ee   :  { %3050 = vrsqrt.f32 %v1721_v30 }
 0x5ef   :  { %v1707_v33 = vpop.xlane.xlu0 %1706 }
 0x5f0   :  { %v1719_v11 = vadd.f32 1.0, %v1707_v33 }
 0x5f1   :  { %v1710_v50 = vpop.xlane.xlu1 %1709 }
 0x5f2   :  { %v1720_v57 = vadd.f32 1.0, %v1710_v50  ;;  %3052 = vrsqrt.f32 %v1719_v11 }
 0x5f3   :  { %v1701_v52 = vpop.xlane.xlu0 %1700 }
 0x5f4   :  { %3054 = vrsqrt.f32 %v1720_v57  ;;  %v1717_v60 = vadd.f32 1.0, %v1701_v52 }
 0x5f5   :  { %v1704_v7 = vpop.xlane.xlu1 %1703 }
 0x5f6   :  { %v1718_v15 = vadd.f32 1.0, %v1704_v7  ;;  %3056 = vrsqrt.f32 %v1717_v60 }
 0x5f8   :  { %3058 = vrsqrt.f32 %v1718_v15 }
 0x5f9   :  { %v1695_v43 = vpop.xlane.xlu0 %1694  ;;  %v1698_v13 = vpop.xlane.xlu1 %1697 }
 0x5fa   :  { %v1715_v37 = vadd.f32 1.0, %v1695_v43  ;;  %v1716_v24 = vadd.f32 1.0, %v1698_v13 }
 0x5fb   :  { %v4307_v8 = vpop.eup %3050 }
 0x5fc   :  { %3060 = vrsqrt.f32 %v1715_v37  ;;  %v4310_v10 = vmul.f32 %v4307_v8, %v2861_v36 }
 0x5fd   :  { %3062 = vrsqrt.f32 %v1716_v24 }
 0x5fe   :  { %2890 = vmatprep.subr.mxu1 %v4310_v10 }
 0x5ff   :  { %2891 = vmatpush3.msra.mxu1 %v4310_v10  ;;  %v1692_v6 = vpop.xlane.xlu1 %1691  ;;  %v4314_v63 = vpop.eup %3052 }
 0x600   :  { %v1714_v49 = vadd.f32 1.0, %v1692_v6  ;;  %v4325_v40 = vmul.f32 %v4314_v63, %v2858_v29 }
 0x601   :  { %v4316_v27 = vpop.eup %3054 }
 0x602   :  { %3064 = vrsqrt.f32 %v1714_v49  ;;  %v4319_v26 = vmul.f32 %v4316_v27, %v1484_v35 }
 0x603   :  { %v4321_v39 = vpop.eup %3056 }
 0x604   :  { %2892 = vmatprep.subr.mxu1 %v4319_v26  ;;  %v4337_v18 = vmul.f32 %v4321_v39, %v2855_v17 }
 0x605   :  { %v4327_v31 = vpop.eup %3058  ;;  %2893 = vmatpush3.msra.mxu1 %v4319_v26 }
 0x606   :  { %2894 = vmatprep.subr.mxu1 %v4325_v40  ;;  %v4332_v53 = vmul.f32 %v4327_v31, %v1474_v22 }
 0x607   :  { %2895 = vmatpush3.msra.mxu1 %v4325_v40 }
 0x608   :  { %2896 = vmatprep.subr.mxu1 %v4332_v53 }
 0x609   :  { %v4339_v46 = vpop.eup %3060  ;;  %2897 = vmatpush3.msra.mxu1 %v4332_v53 }
 0x60a   :  { %v4342_v23 = vpop.eup %3062  ;;  %2898 = vmatprep.subr.mxu1 %v4337_v18  ;;  %v1731_v0 = vmul.f32 %v4339_v46, %v2852_v41 }
 0x60b   :  { %2899 = vmatpush3.msra.mxu1 %v4337_v18  ;;  %v4347_v5 = vmul.f32 %v4342_v23, %v1464_v59 }
 0x60d   :  { %2900 = vmatprep.subr.mxu1 %v4347_v5 }
 0x60e   :  { %2901 = vmatpush3.msra.mxu1 %v4347_v5 }
 0x60f   :  { %v4352_v34 = vpop.eup %3064  ;;  %2902 = vmatprep.subr.mxu1 %v1731_v0 }
 0x610   :  { %2903 = vmatpush3.msra.mxu1 %v1731_v0  ;;  %v1730_v4 = vmul.f32 %v4352_v34, %v1454_v3  ;;  %v4378_v3 = vld [vmem:[%s4642_s3 + $0x48] ss:$0 sm:$0xff] }
 0x612   :  { %2904 = vmatprep.subr.mxu1 %v1730_v4 }
 0x613   :  { %2905 = vmatpush3.msra.mxu1 %v1730_v4 }
 0x614   :  { %2907 = vmatmul.mubr.msk.f32.vlgmr.msra.gmra.mxu1 %vm4843_vm0, %v4224_v42  ;;  %2918 = vmatprep.subr.mxu1 %v51_v56 }
 0x615   :  { %2909 = vmatprep.mubr.msk.f32.mxu1 %vm4844_vm14, %v4221_v28  ;;  %2919 = vmatpush3.msra.mxu1 %v51_v56 }
 0x618   :  { %2910 = vmatmul.mubr.msk.f32.gmra.mxu1 %vm4845_vm6, %v4208_v58 }
 0x619   :  { %2912 = vmatprep.mubr.msk.f32.mxu1 %vm4846_vm8, %v4215_v14 }
 0x61c   :  { %2913 = vmatmul.mubr.msk.f32.gmra.mxu1 %vm4847_vm10, %v4202_v12 }
 0x61d   :  { %2915 = vmatprep.mubr.msk.f32.mxu1 %vm4848_vm11, %v4210_v19 }
 0x620   :  { %2916 = vmatmul.mubr.msk.f32.gmra.mxu1 %vm4849_vm15, %v4197_v1 }
 0x68f   :  { %v2880_v28 = vpop.f32.mrf.mxu1 }
 0x690   :  { %v1637_v58 = vadd.f32 %v2880_v28, %v4281_v20 }
 0x691   :  { %v1631_v42 = vpop.f32.mrf.mxu1 }
 0x692   :  { %v1632_v14 = vadd.f32 %v1631_v42, %v4286_v25  ;;  %v1671_v12 = vmul.f32 %v4269_v2, %v1637_v58 }
 0x693   :  { %v2883_v41 = vpop.f32.mrf.mxu1 }
 0x694   :  { %v1670_v19 = vmul.f32 %v4276_v44, %v1632_v14  ;;  %v1647_v17 = vadd.f32 %v2883_v41, %v4267_v61  ;;  %v4387_v25 = vadd.f32 %v4378_v3, %v1671_v12 }
 0x695   :  { %v1641_v21 = vpop.f32.mrf.mxu1 }
 0x696   :  { %v4383_v1 = vadd.f32 %v4378_v3, %v1670_v19  ;;  %v1642_v20 = vadd.f32 %v1641_v21, %v4274_v9  ;;  %v1673_v2 = vmul.f32 %v4255_v16, %v1647_v17 }
 0x697   :  { %v2886_v30 = vpop.f32.mrf.mxu1 }
 0x698   :  { %v1672_v59 = vmul.f32 %v4262_v47, %v1642_v20  ;;  %v1657_v33 = vadd.f32 %v2886_v30, %v4253_v38  ;;  %2920 = vmatprep.mubr.msk.f32.mxu1 %vm1887_vm9, %v4383_v1  ;;  %v4401_v11 = vadd.f32 %v4378_v3, %v1673_v2 }
 0x699   :  { %v1651_v61 = vpop.f32.mrf.mxu1  ;;  %2921 = vmatmul.mubr.msk.f32.vlgmr.msra.gmra.mxu1 %vm1887_vm9, %v4387_v25 }
 0x69a   :  { %v4397_v44 = vadd.f32 %v4378_v3, %v1672_v59  ;;  %v1652_v9 = vadd.f32 %v1651_v61, %v4260_v32  ;;  %v1675_v16 = vmul.f32 %v4242_v45, %v1657_v33 }
 0x69b   :  { %v2889_v47 = vpop.f32.mrf.mxu1 }
 0x69c   :  { %v1674_v38 = vmul.f32 %v4249_v55, %v1652_v9  ;;  %v1667_v50 = vadd.f32 %v2889_v47, %v4238_v62  ;;  %2923 = vmatprep.mubr.msk.f32.mxu1 %vm1887_vm9, %v4397_v44  ;;  %v4415_v52 = vadd.f32 %v4378_v3, %v1675_v16  ;;  %v4502_v16 = vld [vmem:[%s4642_s3 + $0x60] ss:$0 sm:$0xff] }
 0x69d   :  { %v1661_v57 = vpop.f32.mrf.mxu1  ;;  %2924 = vmatmul.mubr.msk.f32.gmra.mxu1 %vm1887_vm9, %v4401_v11 }
 0x69e   :  { %v4411_v29 = vadd.f32 %v4378_v3, %v1674_v38  ;;  %v1662_v32 = vadd.f32 %v1661_v57, %v4247_v48  ;;  %v1677_v45 = vmul.f32 %v4235_v54, %v1667_v50 }
 0x6a0   :  { %v1676_v55 = vmul.f32 %v4244_v51, %v1662_v32  ;;  %2926 = vmatprep.mubr.msk.f32.mxu1 %vm1887_vm9, %v4411_v29  ;;  %v4427_v60 = vadd.f32 %v4378_v3, %v1677_v45 }
 0x6a1   :  { %2927 = vmatmul.mubr.msk.f32.gmra.mxu1 %vm1887_vm9, %v4415_v52 }
 0x6a2   :  { %v4424_v62 = vadd.f32 %v4378_v3, %v1676_v55 }
 0x6a4   :  { %2929 = vmatprep.mubr.msk.f32.mxu1 %vm1887_vm9, %v4424_v62 }
 0x6a5   :  { %2930 = vmatmul.mubr.msk.f32.gmra.mxu1 %vm1887_vm9, %v4427_v60 }
 0x6d4   :  { %v2908_v54 = vpop.f32.mrf.mxu1 }
 0x6d5   :  { %v1834_v51 = vadd.f32 %v2908_v54, %v1731_v0 }
 0x6d6   :  { %v1828_v48 = vpop.f32.mrf.mxu1 }
 0x6d7   :  { %v1829_v7 = vadd.f32 %v1828_v48, %v1730_v4  ;;  %v1868_v15 = vmul.f32 %v4339_v46, %v1834_v51 }
 0x6d8   :  { %v2911_v22 = vpop.f32.mrf.mxu1 }
 0x6d9   :  { %v1867_v43 = vmul.f32 %v4352_v34, %v1829_v7  ;;  %v1844_v13 = vadd.f32 %v2911_v22, %v4337_v18  ;;  %v4441_v6 = vadd.f32 %v4378_v3, %v1868_v15 }
 0x6da   :  { %v1838_v37 = vpop.f32.mrf.mxu1 }
 0x6db   :  { %v4437_v24 = vadd.f32 %v4378_v3, %v1867_v43  ;;  %v1839_v36 = vadd.f32 %v1838_v37, %v4347_v5  ;;  %v1870_v49 = vmul.f32 %v4321_v39, %v1844_v13 }
 0x6dc   :  { %v2914_v35 = vpop.f32.mrf.mxu1 }
 0x6dd   :  { %v1869_v0 = vmul.f32 %v4342_v23, %v1839_v36  ;;  %v1854_v46 = vadd.f32 %v2914_v35, %v4325_v40  ;;  %2932 = vmatprep.mubr.msk.f32.mxu1 %vm1887_vm9, %v4437_v24  ;;  %v4455_v4 = vadd.f32 %v4378_v3, %v1870_v49 }
 0x6de   :  { %v1848_v18 = vpop.f32.mrf.mxu1  ;;  %2933 = vmatmul.mubr.msk.f32.gmra.mxu1 %vm1887_vm9, %v4441_v6 }
 0x6df   :  { %v4451_v34 = vadd.f32 %v4378_v3, %v1869_v0  ;;  %v1849_v5 = vadd.f32 %v1848_v18, %v4332_v53  ;;  %v1872_v39 = vmul.f32 %v4314_v63, %v1854_v46 }
 0x6e0   :  { %v2917_v23 = vpop.f32.mrf.mxu1 }
 0x6e1   :  { %v1871_v40 = vmul.f32 %v4327_v31, %v1849_v5  ;;  %v1864_v56 = vadd.f32 %v2917_v23, %v4310_v10  ;;  %2935 = vmatprep.mubr.msk.f32.mxu1 %vm1887_vm9, %v4451_v34  ;;  %v4469_v42 = vadd.f32 %v4378_v3, %v1872_v39 }
 0x6e2   :  { %v1858_v28 = vpop.f32.mrf.mxu1  ;;  %2936 = vmatmul.mubr.msk.f32.gmra.mxu1 %vm1887_vm9, %v4455_v4 }
 0x6e3   :  { %v4465_v58 = vadd.f32 %v4378_v3, %v1871_v40  ;;  %v1859_v53 = vadd.f32 %v1858_v28, %v4319_v26  ;;  %v1874_v63 = vmul.f32 %v4307_v8, %v1864_v56  ;;  %v4490_v8 = vld [vmem:[%s4642_s3 + $0x58] ss:$0 sm:$0xff] }
 0x6e5   :  { %v1873_v31 = vmul.f32 %v4316_v27, %v1859_v53  ;;  %2938 = vmatprep.mubr.msk.f32.mxu1 %vm1887_vm9, %v4465_v58  ;;  %v4481_v14 = vadd.f32 %v4378_v3, %v1874_v63 }
 0x6e6   :  { %2939 = vmatmul.mubr.msk.f32.gmra.mxu1 %vm1887_vm9, %v4469_v42 }
 0x6e7   :  { %v4478_v10 = vadd.f32 %v4378_v3, %v1873_v31 }
 0x6e9   :  { %2941 = vmatprep.mubr.msk.f32.mxu1 %vm1887_vm9, %v4478_v10 }
 0x6ea   :  { %2942 = vmatmul.mubr.msk.f32.gmra.mxu1 %vm1887_vm9, %v4481_v14 }
 0x759   :  { %v2922_v27 = vpop.f32.mrf.mxu1 }
 0x75a   :  { %v2008_v26 = vadd.f32 %v2922_v27, %v4490_v8 }
 0x75b   :  { %v2002_v12 = vpop.f32.mrf.mxu1 }
 0x75c   :  { %3066 = vtanh.f32 %v2008_v26  ;;  %v2003_v41 = vadd.f32 %v4490_v8, %v2002_v12 }
 0x75d   :  { %v2925_v3 = vpop.f32.mrf.mxu1 }
 0x75e   :  { %3068 = vtanh.f32 %v2003_v41  ;;  %v2018_v19 = vadd.f32 %v2925_v3, %v4490_v8 }
 0x75f   :  { %v2012_v17 = vpop.f32.mrf.mxu1 }
 0x760   :  { %3070 = vtanh.f32 %v2018_v19  ;;  %v2013_v21 = vadd.f32 %v4490_v8, %v2012_v17 }
 0x761   :  { %v2928_v20 = vpop.f32.mrf.mxu1 }
 0x762   :  { %3072 = vtanh.f32 %v2013_v21  ;;  %v2028_v2 = vadd.f32 %v2928_v20, %v4490_v8 }
 0x763   :  { %v2022_v30 = vpop.f32.mrf.mxu1 }
 0x764   :  { %3074 = vtanh.f32 %v2028_v2  ;;  %v2023_v59 = vadd.f32 %v4490_v8, %v2022_v30 }
 0x765   :  { %v2931_v33 = vpop.f32.mrf.mxu1 }
 0x766   :  { %3076 = vtanh.f32 %v2023_v59  ;;  %v2038_v61 = vadd.f32 %v2931_v33, %v4490_v8 }
 0x767   :  { %v2032_v9 = vpop.f32.mrf.mxu1 }
 0x768   :  { %3078 = vtanh.f32 %v2038_v61  ;;  %v2033_v47 = vadd.f32 %v4490_v8, %v2032_v9 }
 0x769   :  { %v3067_v38 = vpop.eup %3066 }
 0x76a   :  { %3080 = vtanh.f32 %v2033_v47  ;;  %v2102_v50 = vmul.f32 %v3067_v38, %v4502_v16 }
 0x76b   :  { %v3069_v57 = vpop.eup %3068 }
 0x76c   :  { %v2120_v32 = vsel %vm1887_vm9, %v2102_v50, 0.0  ;;  %v2101_v45 = vmul.f32 %v3069_v57, %v4502_v16 }
 0x76d   :  { %v3071_v55 = vpop.eup %3070  ;;  %2121 = vadd.xlane.f32.xlu1 %v2120_v32 }
 0x76e   :  { %v2117_v54 = vsel %vm1887_vm9, %v2101_v45, 0.0  ;;  %v2104_v51 = vmul.f32 %v3071_v55, %v4502_v16 }
 0x76f   :  { %v3073_v48 = vpop.eup %3072  ;;  %2118 = vadd.xlane.f32.xlu0 %v2117_v54 }
 0x770   :  { %v2126_v7 = vsel %vm1887_vm9, %v2104_v51, 0.0  ;;  %v2103_v15 = vmul.f32 %v3073_v48, %v4502_v16 }
 0x771   :  { %v3075_v22 = vpop.eup %3074  ;;  %2127 = vadd.xlane.f32.xlu1 %v2126_v7 }
 0x772   :  { %v2123_v43 = vsel %vm1887_vm9, %v2103_v15, 0.0  ;;  %v2106_v13 = vmul.f32 %v3075_v22, %v4502_v16 }
 0x773   :  { %v3077_v37 = vpop.eup %3076  ;;  %2124 = vadd.xlane.f32.xlu0 %v2123_v43 }
 0x774   :  { %v2132_v36 = vsel %vm1887_vm9, %v2106_v13, 0.0  ;;  %v2105_v49 = vmul.f32 %v3077_v37, %v4502_v16 }
 0x775   :  { %v3079_v35 = vpop.eup %3078  ;;  %2133 = vadd.xlane.f32.xlu1 %v2132_v36 }
 0x776   :  { %v2129_v0 = vsel %vm1887_vm9, %v2105_v49, 0.0  ;;  %v2108_v46 = vmul.f32 %v3079_v35, %v4502_v16 }
 0x777   :  { %v3081_v18 = vpop.eup %3080  ;;  %2130 = vadd.xlane.f32.xlu0 %v2129_v0 }
 0x778   :  { %v2138_v5 = vsel %vm1887_vm9, %v2108_v46, 0.0  ;;  %v2107_v39 = vmul.f32 %v3081_v18, %v4502_v16 }
 0x779   :  { %2139 = vadd.xlane.f32.xlu1 %v2138_v5 }
 0x77a   :  { %v2135_v23 = vsel %vm1887_vm9, %v2107_v39, 0.0 }
 0x77b   :  { %2136 = vadd.xlane.f32.xlu0 %v2135_v23 }
 0x79e   :  { %v2934_v40 = vpop.f32.mrf.mxu1 }
 0x79f   :  { %v2048_v56 = vadd.f32 %v2934_v40, %v4490_v8 }
 0x7a0   :  { %v2042_v28 = vpop.f32.mrf.mxu1 }
 0x7a1   :  { %3082 = vtanh.f32 %v2048_v56  ;;  %v2043_v53 = vadd.f32 %v4490_v8, %v2042_v28 }
 0x7a2   :  { %v2937_v63 = vpop.f32.mrf.mxu1 }
 0x7a3   :  { %3084 = vtanh.f32 %v2043_v53  ;;  %v2058_v31 = vadd.f32 %v2937_v63, %v4490_v8 }
 0x7a4   :  { %v2052_v27 = vpop.f32.mrf.mxu1 }
 0x7a5   :  { %3086 = vtanh.f32 %v2058_v31  ;;  %v2053_v26 = vadd.f32 %v4490_v8, %v2052_v27 }
 0x7a6   :  { %v2940_v12 = vpop.f32.mrf.mxu1 }
 0x7a7   :  { %3088 = vtanh.f32 %v2053_v26  ;;  %v2068_v41 = vadd.f32 %v2940_v12, %v4490_v8 }
 0x7a8   :  { %v2062_v3 = vpop.f32.mrf.mxu1 }
 0x7a9   :  { %3090 = vtanh.f32 %v2068_v41  ;;  %v2063_v19 = vadd.f32 %v4490_v8, %v2062_v3 }
 0x7aa   :  { %v2943_v17 = vpop.f32.mrf.mxu1 }
 0x7ab   :  { %3092 = vtanh.f32 %v2063_v19  ;;  %v2078_v21 = vadd.f32 %v2943_v17, %v4490_v8 }
 0x7ac   :  { %v2072_v20 = vpop.f32.mrf.mxu1 }
 0x7ad   :  { %3094 = vtanh.f32 %v2078_v21  ;;  %v2073_v2 = vadd.f32 %v4490_v8, %v2072_v20 }
 0x7ae   :  { %v3083_v30 = vpop.eup %3082 }
 0x7af   :  { %3096 = vtanh.f32 %v2073_v2  ;;  %v2110_v59 = vmul.f32 %v3083_v30, %v4502_v16 }
 0x7b0   :  { %v3085_v33 = vpop.eup %3084 }
 0x7b1   :  { %v2144_v61 = vsel %vm1887_vm9, %v2110_v59, 0.0  ;;  %v2109_v9 = vmul.f32 %v3085_v33, %v4502_v16 }
 0x7b2   :  { %v3087_v47 = vpop.eup %3086  ;;  %2145 = vadd.xlane.f32.xlu1 %v2144_v61 }
 0x7b3   :  { %v2141_v38 = vsel %vm1887_vm9, %v2109_v9, 0.0  ;;  %v2112_v50 = vmul.f32 %v3087_v47, %v4502_v16 }
 0x7b4   :  { %v3089_v57 = vpop.eup %3088  ;;  %2142 = vadd.xlane.f32.xlu0 %v2141_v38 }
 0x7b5   :  { %v2150_v32 = vsel %vm1887_vm9, %v2112_v50, 0.0  ;;  %v2111_v8 = vmul.f32 %v3089_v57, %v4502_v16 }
 0x7b6   :  { %v3091_v45 = vpop.eup %3090  ;;  %2151 = vadd.xlane.f32.xlu1 %v2150_v32 }
 0x7b7   :  { %v2147_v55 = vsel %vm1887_vm9, %v2111_v8, 0.0  ;;  %v2114_v54 = vmul.f32 %v3091_v45, %v4502_v16 }
 0x7b8   :  { %v3093_v51 = vpop.eup %3092  ;;  %2148 = vadd.xlane.f32.xlu0 %v2147_v55 }
 0x7b9   :  { %v2156_v48 = vsel %vm1887_vm9, %v2114_v54, 0.0  ;;  %v2113_v7 = vmul.f32 %v3093_v51, %v4502_v16 }
 0x7ba   :  { %v3095_v15 = vpop.eup %3094  ;;  %2157 = vadd.xlane.f32.xlu1 %v2156_v48 }
 0x7bb   :  { %v2153_v22 = vsel %vm1887_vm9, %v2113_v7, 0.0  ;;  %v2116_v43 = vmul.f32 %v3095_v15, %v4502_v16 }
 0x7bc   :  { %v3097_v13 = vpop.eup %3096  ;;  %2154 = vadd.xlane.f32.xlu0 %v2153_v22 }
 0x7bd   :  { %v2162_v37 = vsel %vm1887_vm9, %v2116_v43, 0.0  ;;  %v2115_v36 = vmul.f32 %v3097_v13, %v4502_v16 }
 0x7be   :  { %2163 = vadd.xlane.f32.xlu1 %v2162_v37 }
 0x7bf   :  { %v2159_v49 = vsel %vm1887_vm9, %v2115_v36, 0.0 }
 0x7c0   :  { %2160 = vadd.xlane.f32.xlu0 %v2159_v49 }
 0x7f6   :  { %v2122_v35 = vpop.xlane.xlu1 %2121 }
 0x7f8   :  { %v2119_v0 = vpop.xlane.xlu0 %2118 }
 0x7fa   :  { %v2128_v46 = vpop.xlane.xlu1 %2127 }
 0x7fc   :  { %v2125_v18 = vpop.xlane.xlu0 %2124 }
 0x7fe   :  { %v2134_v5 = vpop.xlane.xlu1 %2133 }
 0x800   :  { %v2131_v39 = vpop.xlane.xlu0 %2130 }
 0x802   :  { %v2140_v23 = vpop.xlane.xlu1 %2139 }
 0x804   :  { %v2137_v40 = vpop.xlane.xlu0 %2136 }
 0x83b   :  { %v2146_v56 = vpop.xlane.xlu1 %2145 }
 0x83c   :  { %v2166_v28 = vmax.f32 %v2122_v35, %v2146_v56 }
 0x83d   :  { %v2143_v53 = vpop.xlane.xlu0 %2142 }
 0x83e   :  { %v2174_v63 = vsub.f32 %v2122_v35, %v2166_v28  ;;  %v2198_v31 = vsub.f32 %v2146_v56, %v2166_v28  ;;  %v2165_v27 = vmax.f32 %v2119_v0, %v2143_v53 }
 0x83f   :  { %v2152_v26 = vpop.xlane.xlu1 %2151 }
 0x840   :  { %v2183_v16 = vmul.f32 1.442695, %v2174_v63  ;;  %v2207_v12 = vmul.f32 1.442695, %v2198_v31  ;;  %v2173_v41 = vsub.f32 %v2119_v0, %v2165_v27  ;;  %v2197_v3 = vsub.f32 %v2143_v53, %v2165_v27 }
 0x841   :  { %v2168_v19 = vmax.f32 %v2128_v46, %v2152_v26  ;;  %v2149_v17 = vpop.xlane.xlu0 %2148 }
 0x842   :  { %3098 = vpow2.f32 %v2183_v16  ;;  %v2181_v21 = vmul.f32 1.442695, %v2173_v41  ;;  %v2205_v20 = vmul.f32 1.442695, %v2197_v3  ;;  %v2167_v2 = vmax.f32 %v2125_v18, %v2149_v17 }
 0x843   :  { %3100 = vpow2.f32 %v2207_v12  ;;  %v2176_v30 = vsub.f32 %v2128_v46, %v2168_v19  ;;  %v2200_v59 = vsub.f32 %v2152_v26, %v2168_v19  ;;  %v2158_v33 = vpop.xlane.xlu1 %2157 }
 0x844   :  { %3102 = vpow2.f32 %v2181_v21  ;;  %v2175_v61 = vsub.f32 %v2125_v18, %v2167_v2  ;;  %v2199_v9 = vsub.f32 %v2149_v17, %v2167_v2  ;;  %v2170_v47 = vmax.f32 %v2134_v5, %v2158_v33 }
 0x845   :  { %3104 = vpow2.f32 %v2205_v20  ;;  %v2187_v38 = vmul.f32 1.442695, %v2176_v30  ;;  %v2211_v50 = vmul.f32 1.442695, %v2200_v59  ;;  %v2155_v57 = vpop.xlane.xlu0 %2154 }
 0x846   :  { %v2185_v32 = vmul.f32 1.442695, %v2175_v61  ;;  %v2209_v8 = vmul.f32 1.442695, %v2199_v9  ;;  %v2178_v45 = vsub.f32 %v2134_v5, %v2170_v47  ;;  %v2202_v55 = vsub.f32 %v2158_v33, %v2170_v47 }
 0x847   :  { %3106 = vpow2.f32 %v2187_v38  ;;  %v2169_v54 = vmax.f32 %v2131_v39, %v2155_v57  ;;  %v2164_v51 = vpop.xlane.xlu1 %2163 }
 0x848   :  { %3108 = vpow2.f32 %v2211_v50  ;;  %v2191_v48 = vmul.f32 1.442695, %v2178_v45  ;;  %v2215_v7 = vmul.f32 1.442695, %v2202_v55  ;;  %v2172_v15 = vmax.f32 %v2140_v23, %v2164_v51 }
 0x849   :  { %3110 = vpow2.f32 %v2185_v32  ;;  %v2177_v22 = vsub.f32 %v2131_v39, %v2169_v54  ;;  %v2201_v43 = vsub.f32 %v2155_v57, %v2169_v54  ;;  %v2161_v13 = vpop.xlane.xlu0 %2160 }
 0x84a   :  { %3112 = vpow2.f32 %v2209_v8  ;;  %v2180_v37 = vsub.f32 %v2140_v23, %v2172_v15  ;;  %v2204_v36 = vsub.f32 %v2164_v51, %v2172_v15  ;;  %v2171_v49 = vmax.f32 %v2137_v40, %v2161_v13 }
 0x84b   :  { %3114 = vpow2.f32 %v2191_v48  ;;  %v2189_v35 = vmul.f32 1.442695, %v2177_v22  ;;  %v2213_v0 = vmul.f32 1.442695, %v2201_v43 }
 0x84c   :  { %3116 = vpow2.f32 %v2215_v7  ;;  %v2195_v46 = vmul.f32 1.442695, %v2180_v37  ;;  %v2219_v18 = vmul.f32 1.442695, %v2204_v36  ;;  %v2179_v5 = vsub.f32 %v2137_v40, %v2171_v49 }
 0x84d   :  { %3118 = vpow2.f32 %v2189_v35  ;;  %v2203_v56 = vsub.f32 %v2161_v13, %v2171_v49 }
 0x84e   :  { %3120 = vpow2.f32 %v2213_v0  ;;  %v2193_v28 = vmul.f32 1.442695, %v2179_v5 }
 0x84f   :  { %v3099_v53 = vpop.eup %3098  ;;  %3122 = vpow2.f32 %v2195_v46  ;;  %v2217_v39 = vmul.f32 1.442695, %v2203_v56 }
 0x850   :  { %v3101_v63 = vpop.eup %3100  ;;  %3124 = vpow2.f32 %v2219_v18 }
 0x851   :  { %v3103_v31 = vpop.eup %3102  ;;  %v2222_v23 = vadd.f32 %v3101_v63, %v3099_v53  ;;  %3126 = vpow2.f32 %v2193_v28 }
 0x852   :  { %v3105_v27 = vpop.eup %3104  ;;  %3128 = vpow2.f32 %v2217_v39 }
 0x853   :  { %3130 = vrcp.f32 %v2222_v23  ;;  %v2221_v26 = vadd.f32 %v3105_v27, %v3103_v31 }
 0x854   :  { %v3107_v16 = vpop.eup %3106 }
 0x855   :  { %v3109_v12 = vpop.eup %3108  ;;  %3132 = vrcp.f32 %v2221_v26 }
 0x856   :  { %v3111_v40 = vpop.eup %3110  ;;  %v2224_v41 = vadd.f32 %v3109_v12, %v3107_v16 }
 0x857   :  { %v3113_v3 = vpop.eup %3112 }
 0x858   :  { %v3115_v19 = vpop.eup %3114  ;;  %3134 = vrcp.f32 %v2224_v41  ;;  %v2223_v17 = vadd.f32 %v3113_v3, %v3111_v40 }
 0x859   :  { %v3117_v21 = vpop.eup %3116 }
 0x85a   :  { %v3119_v20 = vpop.eup %3118  ;;  %3136 = vrcp.f32 %v2223_v17  ;;  %v2226_v2 = vadd.f32 %v3117_v21, %v3115_v19 }
 0x85b   :  { %v3121_v30 = vpop.eup %3120 }
 0x85c   :  { %v3123_v59 = vpop.eup %3122  ;;  %3138 = vrcp.f32 %v2226_v2  ;;  %v2225_v33 = vadd.f32 %v3121_v30, %v3119_v20 }
 0x85d   :  { %v3125_v61 = vpop.eup %3124 }
 0x85e   :  { %v3127_v9 = vpop.eup %3126  ;;  %3140 = vrcp.f32 %v2225_v33  ;;  %v2228_v47 = vadd.f32 %v3125_v61, %v3123_v59 }
 0x85f   :  { %v3129_v38 = vpop.eup %3128 }
 0x860   :  { %v3131_v50 = vpop.eup %3130  ;;  %3142 = vrcp.f32 %v2228_v47  ;;  %v2227_v57 = vadd.f32 %v3129_v38, %v3127_v9 }
 0x861   :  { %v2238_v32 = vmul.f32 %v3131_v50, %v3099_v53  ;;  %v2254_v8 = vmul.f32 %v3131_v50, %v3101_v63 }
 0x862   :  { %v3133_v45 = vpop.eup %3132  ;;  %3144 = vrcp.f32 %v2227_v57 }
 0x863   :  { %v2246_v55 = vmul.f32 %v2238_v32, %v4387_v25  ;;  %v2262_v54 = vmul.f32 %v2254_v8, %v4441_v6  ;;  %v2237_v51 = vmul.f32 %v3133_v45, %v3103_v31  ;;  %v2253_v48 = vmul.f32 %v3133_v45, %v3105_v27 }
 0x865   :  { %v3135_v7 = vpop.eup %3134  ;;  %v2270_v15 = vadd.f32 %v2262_v54, %v2246_v55  ;;  %v2245_v22 = vmul.f32 %v2237_v51, %v4383_v1  ;;  %v2261_v43 = vmul.f32 %v2253_v48, %v4437_v24 }
 0x866   :  { %v2240_v13 = vmul.f32 %v3135_v7, %v3107_v16  ;;  %v2256_v37 = vmul.f32 %v3135_v7, %v3109_v12 }
 0x867   :  { %v3137_v36 = vpop.eup %3136  ;;  %v2280_v49 = vsel %vm1887_vm9, %v2270_v15, -inf  ;;  %v2269_v35 = vadd.f32 %v2261_v43, %v2245_v22 }
 0x868   :  { %2281 = vmax.xlane.f32.xlu1 %v2280_v49  ;;  %v2248_v0 = vmul.f32 %v2240_v13, %v4401_v11  ;;  %v2264_v25 = vmul.f32 %v2256_v37, %v4455_v4  ;;  %v2239_v6 = vmul.f32 %v3137_v36, %v3111_v40  ;;  %v2255_v46 = vmul.f32 %v3137_v36, %v3113_v3 }
 0x869   :  { %v3139_v18 = vpop.eup %3138  ;;  %v2277_v5 = vsel %vm1887_vm9, %v2269_v35, -inf }
 0x86a   :  { %2278 = vmax.xlane.f32.xlu0 %v2277_v5  ;;  %v2272_v1 = vadd.f32 %v2264_v25, %v2248_v0  ;;  %v2247_v24 = vmul.f32 %v2239_v6, %v4397_v44  ;;  %v2263_v56 = vmul.f32 %v2255_v46, %v4451_v34  ;;  %v2242_v28 = vmul.f32 %v3139_v18, %v3115_v19 }
 0x86b   :  { %v3141_v53 = vpop.eup %3140  ;;  %v2258_v39 = vmul.f32 %v3139_v18, %v3117_v21 }
 0x86c   :  { %v2286_v63 = vsel %vm1887_vm9, %v2272_v1, -inf  ;;  %v2271_v31 = vadd.f32 %v2263_v56, %v2247_v24  ;;  %v2250_v11 = vmul.f32 %v2242_v28, %v4415_v52  ;;  %v2241_v4 = vmul.f32 %v3141_v53, %v3119_v20 }
 0x86d   :  { %v3143_v23 = vpop.eup %3142  ;;  %2287 = vmax.xlane.f32.xlu1 %v2286_v63  ;;  %v2266_v27 = vmul.f32 %v2258_v39, %v4469_v42  ;;  %v2257_v26 = vmul.f32 %v3141_v53, %v3121_v30 }
 0x86e   :  { %v2283_v16 = vsel %vm1887_vm9, %v2271_v31, -inf  ;;  %v2249_v44 = vmul.f32 %v2241_v4, %v4411_v29  ;;  %v2244_v12 = vmul.f32 %v3143_v23, %v3123_v59  ;;  %v2260_v34 = vmul.f32 %v3143_v23, %v3125_v61 }
 0x86f   :  { %v3145_v40 = vpop.eup %3144  ;;  %2284 = vmax.xlane.f32.xlu0 %v2283_v16  ;;  %v2274_v41 = vadd.f32 %v2266_v27, %v2250_v11  ;;  %v2265_v3 = vmul.f32 %v2257_v26, %v4465_v58 }
 0x870   :  { %v2252_v19 = vmul.f32 %v2244_v12, %v4427_v60  ;;  %v2268_v52 = vmul.f32 %v2260_v34, %v4481_v14  ;;  %v2243_v17 = vmul.f32 %v3145_v40, %v3127_v9  ;;  %v2259_v21 = vmul.f32 %v3145_v40, %v3129_v38 }
 0x871   :  { %v2292_v42 = vsel %vm1887_vm9, %v2274_v41, -inf  ;;  %v2273_v20 = vadd.f32 %v2265_v3, %v2249_v44 }
 0x872   :  { %2293 = vmax.xlane.f32.xlu1 %v2292_v42  ;;  %v2276_v2 = vadd.f32 %v2268_v52, %v2252_v19  ;;  %v2251_v29 = vmul.f32 %v2243_v17, %v4424_v62  ;;  %v2267_v30 = vmul.f32 %v2259_v21, %v4478_v10 }
 0x873   :  { %v2289_v59 = vsel %vm1887_vm9, %v2273_v20, -inf }
 0x874   :  { %2290 = vmax.xlane.f32.xlu0 %v2289_v59  ;;  %v2298_v58 = vsel %vm1887_vm9, %v2276_v2, -inf  ;;  %v2275_v33 = vadd.f32 %v2267_v30, %v2251_v29 }
 0x876   :  { %2299 = vmax.xlane.f32.xlu1 %v2298_v58  ;;  %v2295_v60 = vsel %vm1887_vm9, %v2275_v33, -inf }
 0x878   :  { %2296 = vmax.xlane.f32.xlu0 %v2295_v60 }
 0x8f1   :  { %v2282_v14 = vpop.xlane.xlu1 %2281 }
 0x8f2   :  { %v4569_v61 = vsub.f32 %v2270_v15, %v2282_v14 }
 0x8f3   :  { %v2279_v9 = vpop.xlane.xlu0 %2278 }
 0x8f4   :  { %v2311_v47 = vmul.f32 1.442695, %v4569_v61  ;;  %v4572_v38 = vsub.f32 %v2269_v35, %v2279_v9 }
 0x8f6   :  { %3146 = vpow2.f32 %v2311_v47  ;;  %v2309_v62 = vmul.f32 1.442695, %v4572_v38  ;;  %v2288_v10 = vpop.xlane.xlu1 %2287 }
 0x8f7   :  { %v4575_v50 = vsub.f32 %v2272_v1, %v2288_v10 }
 0x8f8   :  { %3148 = vpow2.f32 %v2309_v62  ;;  %v2285_v57 = vpop.xlane.xlu0 %2284 }
 0x8f9   :  { %v2315_v32 = vmul.f32 1.442695, %v4575_v50  ;;  %v4578_v8 = vsub.f32 %v2271_v31, %v2285_v57 }
 0x8fb   :  { %3150 = vpow2.f32 %v2315_v32  ;;  %v2313_v45 = vmul.f32 1.442695, %v4578_v8  ;;  %v2294_v55 = vpop.xlane.xlu1 %2293 }
 0x8fc   :  { %v4581_v54 = vsub.f32 %v2274_v41, %v2294_v55 }
 0x8fd   :  { %3152 = vpow2.f32 %v2313_v45  ;;  %v2291_v51 = vpop.xlane.xlu0 %2290 }
 0x8fe   :  { %v2319_v48 = vmul.f32 1.442695, %v4581_v54  ;;  %v4584_v7 = vsub.f32 %v2273_v20, %v2291_v51 }
 0x8ff   :  { %v2300_v15 = vpop.xlane.xlu1 %2299 }
 0x900   :  { %3154 = vpow2.f32 %v2319_v48  ;;  %v2317_v22 = vmul.f32 1.442695, %v4584_v7  ;;  %v4587_v43 = vsub.f32 %v2276_v2, %v2300_v15 }
 0x901   :  { %v2297_v13 = vpop.xlane.xlu0 %2296 }
 0x902   :  { %3156 = vpow2.f32 %v2317_v22  ;;  %v2323_v37 = vmul.f32 1.442695, %v4587_v43  ;;  %v4590_v36 = vsub.f32 %v2275_v33, %v2297_v13 }
 0x903   :  { %v3147_v49 = vpop.eup %3146 }
 0x904   :  { %3158 = vpow2.f32 %v2323_v37  ;;  %v2321_v35 = vmul.f32 1.442695, %v4590_v36  ;;  %v2328_v0 = vsel %vm1887_vm9, %v3147_v49, 0.0 }
 0x905   :  { %v3149_v25 = vpop.eup %3148  ;;  %2329 = vadd.xlane.f32.xlu1 %v2328_v0 }
 0x906   :  { %3160 = vpow2.f32 %v2321_v35  ;;  %v2325_v6 = vsel %vm1887_vm9, %v3149_v25, 0.0 }
 0x907   :  { %2326 = vadd.xlane.f32.xlu0 %v2325_v6 }
 0x908   :  { %v3151_v46 = vpop.eup %3150 }
 0x909   :  { %v2334_v18 = vsel %vm1887_vm9, %v3151_v46, 0.0 }
 0x90a   :  { %v3153_v5 = vpop.eup %3152  ;;  %2335 = vadd.xlane.f32.xlu1 %v2334_v18 }
 0x90b   :  { %v2331_v1 = vsel %vm1887_vm9, %v3153_v5, 0.0 }
 0x90c   :  { %2332 = vadd.xlane.f32.xlu0 %v2331_v1 }
 0x90d   :  { %v3155_v24 = vpop.eup %3154 }
 0x90e   :  { %v2340_v56 = vsel %vm1887_vm9, %v3155_v24, 0.0 }
 0x90f   :  { %v3157_v28 = vpop.eup %3156  ;;  %2341 = vadd.xlane.f32.xlu1 %v2340_v56 }
 0x910   :  { %v2337_v53 = vsel %vm1887_vm9, %v3157_v28, 0.0 }
 0x911   :  { %v3159_v39 = vpop.eup %3158  ;;  %2338 = vadd.xlane.f32.xlu0 %v2337_v53 }
 0x912   :  { %v2346_v63 = vsel %vm1887_vm9, %v3159_v39, 0.0 }
 0x913   :  { %v3161_v31 = vpop.eup %3160  ;;  %2347 = vadd.xlane.f32.xlu1 %v2346_v63 }
 0x914   :  { %v2343_v11 = vsel %vm1887_vm9, %v3161_v31, 0.0 }
 0x915   :  { %2344 = vadd.xlane.f32.xlu0 %v2343_v11 }
 0x98e   :  { %v2330_v4 = vpop.xlane.xlu1 %2329 }
 0x98f   :  { %3162 = vlog2.f32 %v2330_v4 }
 0x990   :  { %v2327_v23 = vpop.xlane.xlu0 %2326 }
 0x991   :  { %3164 = vlog2.f32 %v2327_v23 }
 0x993   :  { %v2336_v27 = vpop.xlane.xlu1 %2335 }
 0x994   :  { %3166 = vlog2.f32 %v2336_v27 }
 0x995   :  { %v2333_v26 = vpop.xlane.xlu0 %2332 }
 0x996   :  { %3168 = vlog2.f32 %v2333_v26 }
 0x998   :  { %v2342_v16 = vpop.xlane.xlu1 %2341 }
 0x999   :  { %3170 = vlog2.f32 %v2342_v16 }
 0x99a   :  { %v2339_v44 = vpop.xlane.xlu0 %2338 }
 0x99b   :  { %3172 = vlog2.f32 %v2339_v44 }
 0x99c   :  { %v3163_v12 = vpop.eup %3162  ;;  %v2348_v34 = vpop.xlane.xlu1 %2347 }
 0x99d   :  { %v2352_v40 = vmul.f32 0.6931472, %v3163_v12  ;;  %3174 = vlog2.f32 %v2348_v34 }
 0x99e   :  { %v3165_v41 = vpop.eup %3164  ;;  %v2345_v3 = vpop.xlane.xlu0 %2344 }
 0x99f   :  { %v2366_v19 = vsub.f32 %v4569_v61, %v2352_v40  ;;  %v2350_v52 = vmul.f32 0.6931472, %v3165_v41  ;;  %3176 = vlog2.f32 %v2345_v3 }
 0x9a1   :  { %v3167_v17 = vpop.eup %3166  ;;  %2374 = vst.msk [vmem:[%s4645_s4 + $0x8] sm:$0xff] %vm1887_vm9, %v2366_v19  ;;  %v2365_v21 = vsub.f32 %v4572_v38, %v2350_v52 }
 0x9a2   :  { %v2356_v42 = vmul.f32 0.6931472, %v3167_v17 }
 0x9a3   :  { %v3169_v20 = vpop.eup %3168  ;;  %2373 = vst.msk [vmem:[%s4645_s4] sm:$0xff] %vm1887_vm9, %v2365_v21 }
 0x9a4   :  { %v2368_v2 = vsub.f32 %v4575_v50, %v2356_v42  ;;  %v2354_v29 = vmul.f32 0.6931472, %v3169_v20 }
 0x9a6   :  { %v3171_v30 = vpop.eup %3170  ;;  %2376 = vst.msk [vmem:[%s4645_s4 + $0x18] sm:$0xff] %vm1887_vm9, %v2368_v2  ;;  %v2367_v59 = vsub.f32 %v4578_v8, %v2354_v29 }
 0x9a7   :  { %v2360_v58 = vmul.f32 0.6931472, %v3171_v30 }
 0x9a8   :  { %v3173_v33 = vpop.eup %3172  ;;  %2375 = vst.msk [vmem:[%s4645_s4 + $0x10] sm:$0xff] %vm1887_vm9, %v2367_v59 }
 0x9a9   :  { %v2370_v60 = vsub.f32 %v4581_v54, %v2360_v58  ;;  %v2358_v14 = vmul.f32 0.6931472, %v3173_v33 }
 0x9aa   :  { %v3175_v61 = vpop.eup %3174 }
 0x9ab   :  { %2378 = vst.msk [vmem:[%s4645_s4 + $0x28] sm:$0xff] %vm1887_vm9, %v2370_v60  ;;  %v2369_v9 = vsub.f32 %v4584_v7, %v2358_v14  ;;  %v2364_v47 = vmul.f32 0.6931472, %v3175_v61 }
 0x9ac   :  { %v3177_v38 = vpop.eup %3176 }
 0x9ad   :  { %2377 = vst.msk [vmem:[%s4645_s4 + $0x20] sm:$0xff] %vm1887_vm9, %v2369_v9  ;;  %v2372_v62 = vsub.f32 %v4587_v43, %v2364_v47  ;;  %v2362_v10 = vmul.f32 0.6931472, %v3177_v38 }
 0x9af   :  { %2380 = vst.msk [vmem:[%s4645_s4 + $0x38] sm:$0xff] %vm1887_vm9, %v2372_v62  ;;  %v2371_v50 = vsub.f32 %v4590_v36, %v2362_v10 }
 0x9b1   :  { %2379 = vst.msk [vmem:[%s4645_s4 + $0x30] sm:$0xff] %vm1887_vm9, %v2371_v50 }

</bundles_post_ra>
